<compile_context>
chip_gen: v7x
topology: tpu7x:2x2x1
jax: 0.10.0
libtpu: 0.0.40
codegen_flags: <defaults>
</compile_context>

<pallas_src>
import jax
import jax.numpy as jnp
from jax.experimental import pallas as pl
from jax.experimental.pallas import tpu as pltpu

N_HIDDEN_UNITS = 128
KERNEL_SIZE = 3          # MorphologicalModule default kernel_size
COLOR_CH = 3             # ColorModule default color_channels
OUT_PAD = 128            # concatenated regressor output padded to full lane width


# ------------------------------ batch blocking ------------------------------

def _choose_batch_block(B):
    """Return (TB images per grid step, number of grid steps)."""
    if B <= 1:
        return 1, 1
    g = max(2, pl.cdiv(B, 8))      # >=2 steps so v7x megacore shards the batch
    tb = pl.cdiv(B, g)             # <=8 images per step amortizes step overhead
    return tb, pl.cdiv(B, tb)


# ------------------------------ fused kernel --------------------------------

def _make_fused_kernel(H, W, TB, Din):
    KK = KERNEL_SIZE
    base = 1 + KK * KK                               # first color column (=10)
    center = 1 + (KK // 2) * KK + (KK // 2)          # identity-buffer center col

    def kernel(f_ref, w1_ref, b1_ref, w2_ref, b2_ref, w3_ref, b3_ref,
               xpad_ref, o_ref, beta_ref):
        row0 = pl.program_id(0) * TB

        # ---- both regressor MLPs as one 256-wide (block-diagonal) chain ----
        feats = f_ref[pl.ds(row0, TB), :]                                # (TB, Din)
        h = jnp.dot(feats, w1_ref[...], preferred_element_type=jnp.float32) + b1_ref[...]
        h = jnp.maximum(h, 0.0)
        h = jnp.dot(h, w2_ref[...], preferred_element_type=jnp.float32) + b2_ref[...]
        h = jnp.maximum(h, 0.0)
        beta = jnp.dot(h, w3_ref[...], preferred_element_type=jnp.float32) + b3_ref[...]
        # beta: (TB, 128) = [alpha, k0..k8, cw0, cb0, cw1, cb1, cw2, cb2, 0...]

        # ---- in-kernel beta post-processing (identity buffer, sigmoid, +1) ----
        lane = jax.lax.broadcasted_iota(jnp.int32, (TB, OUT_PAD), 1)
        is_kern = (lane >= 1) & (lane < base)
        idb = jnp.where(is_kern, jnp.where(lane == center, 5.0, -5.0), 0.0)
        p = beta + idb
        is_cw = (lane >= base) & (lane < base + 2 * COLOR_CH) & (((lane - base) & 1) == 0)
        # kernel weights -> sigmoid; color weights -> w+1 (diag(w)+I); rest as-is
        beta_ref[...] = jnp.where(is_kern, jax.nn.sigmoid(p),
                                  jnp.where(is_cw, p + 1.0, p))

        # ---- per-image smoothmax (3x3 "unfold") + diagonal color transform ----
        for b in range(TB):
            # hoist all 16 scalar reads before the vector loop
            alpha = beta_ref[b, 0]
            kv = [beta_ref[b, 1 + k] for k in range(KK * KK)]
            cs = [beta_ref[b, base + 2 * i] for i in range(COLOR_CH)]
            cb = [beta_ref[b, base + 2 * i + 1] for i in range(COLOR_CH)]

            xp = xpad_ref[b]                         # (H+2, W+2), zero-padded
            e = jnp.exp(alpha * xp)                  # exp hoisted: exp(a*0)=1 at border

            # hoist lane-direction (dx) shifts: 3 column windows of xp and e
            xc = [xp[:, dx:dx + W] for dx in range(KK)]      # (H+2, W)
            ec = [e[:, dx:dx + W] for dx in range(KK)]       # (H+2, W)

            num = jnp.zeros((H, W), jnp.float32)
            den = jnp.zeros((H, W), jnp.float32)
            for dy in range(KK):
                for dx in range(KK):
                    w = ec[dx][dy:dy + H] * kv[dy * KK + dx]
                    num = num + xc[dx][dy:dy + H] * w
                    den = den + w

            # den > 0 always (sigmoid-weighted sum of exps): EUP approx
            # reciprocal + one Newton step keeps f32 accuracy off the divide.
            r = pl.reciprocal(den, approx=True)
            r = r * (2.0 - den * r)
            s = num * r                              # (H, W) smoothmax plane

            # Color transform (C==1 broadcast to 3 channels, identity clamp):
            # out_i = (w_i + 1) * s + b_i
            for i in range(COLOR_CH):
                o_ref[b, i] = cs[i] * s + cb[i]

    return kernel


# ------------------------------ module wrapper -------------------------------

def fused_morpho_col(x, features, params_m, params_c):
    """regressor_m + regressor_c + MorphologicalModule + ColorModule, one kernel."""
    B, C, H, W = x.shape
    assert C == 1, "morpho (freeze_frg=False) requires a single-channel input"
    Din = features.shape[1]
    HID = N_HIDDEN_UNITS

    w1m, b1m, w2m, b2m, w3m, b3m = params_m
    w1c, b1c, w2c, b2c, w3c, b3c = params_c
    dm, dc = w3m.shape[1], w3c.shape[1]
    assert dm == KERNEL_SIZE ** 2 + 1 and dc == 2 * COLOR_CH

    # Concatenate the two MLPs: layer 1 concatenated, layers 2/3 block-diagonal.
    W1 = jnp.concatenate([w1m, w1c], axis=1)                            # (Din, 256)
    B1 = jnp.concatenate([b1m, b1c], axis=1)                            # (1, 256)
    W2 = (jnp.zeros((2 * HID, 2 * HID), jnp.float32)
          .at[:HID, :HID].set(w2m).at[HID:, HID:].set(w2c))             # (256, 256)
    B2 = jnp.concatenate([b2m, b2c], axis=1)                            # (1, 256)
    W3 = (jnp.zeros((2 * HID, OUT_PAD), jnp.float32)
          .at[:HID, :dm].set(w3m).at[HID:, dm:dm + dc].set(w3c))        # (256, 128)
    B3 = (jnp.zeros((1, OUT_PAD), jnp.float32)
          .at[:, :dm].set(b3m).at[:, dm:dm + dc].set(b3c))              # (1, 128)

    xpad = jnp.pad(x[:, 0].astype(jnp.float32), ((0, 0), (1, 1), (1, 1)))
    feats = features.astype(jnp.float32)

    TB, G = _choose_batch_block(B)
    Bp = TB * G
    if Bp > B:                                   # zero-pad batch to TB*G (safe: exp(0)=1)
        feats = jnp.pad(feats, ((0, Bp - B), (0, 0)))
        xpad = jnp.pad(xpad, ((0, Bp - B), (0, 0), (0, 0)))

    # Weights/features use full-array blocks with constant index maps -> DMA'd
    # once and kept resident across grid steps; the kernel slices its TB rows.
    # TODO(synk): for very large B, M-tile the feature/weight specs properly.
    def const_spec(shape):
        return pl.BlockSpec(shape, lambda g: (0, 0))

    out = pl.pallas_call(
        _make_fused_kernel(H, W, TB, Din),
        grid=(G,),
        in_specs=[
            const_spec((Bp, Din)),                                # features
            const_spec((Din, 2 * HID)), const_spec((1, 2 * HID)),  # W1, B1
            const_spec((2 * HID, 2 * HID)), const_spec((1, 2 * HID)),  # W2, B2
            const_spec((2 * HID, OUT_PAD)), const_spec((1, OUT_PAD)),  # W3, B3
            pl.BlockSpec((TB, H + 2, W + 2), lambda g: (g, 0, 0)),     # xpad
        ],
        out_specs=pl.BlockSpec((TB, COLOR_CH, H, W), lambda g: (g, 0, 0, 0)),
        out_shape=jax.ShapeDtypeStruct((Bp, COLOR_CH, H, W), jnp.float32),
        scratch_shapes=[pltpu.VMEM((TB, OUT_PAD), jnp.float32)],   # processed beta
        compiler_params=pltpu.CompilerParams(
            dimension_semantics=("parallel",),   # batch blocks independent -> megacore
        ),
    )(feats, W1, B1, W2, B2, W3, B3, xpad)
    return out[:B]


def transformation_sequence_forward(x, features, module_params):
    # sequence_name = "id_morpho_col"; no curriculum learning -> all activated.
    i = 0
    while i < len(module_params):
        name, params = module_params[i]
        if name in ("id", "identity"):
            i += 1                                    # IdentityModule returns x
        elif name in ("morpho", "morphological") and i + 1 < len(module_params) \
                and module_params[i + 1][0] in ("col", "color"):
            x = fused_morpho_col(x, features, params, module_params[i + 1][1])
            i += 2
        else:
            # TODO(synk): standalone morpho/col orderings, the ColorModule mask
            # path (C==2 / C>3), and the grid_sample-based modules (affine/
            # position/projective/similarity/tps) need a data-dependent bilinear
            # gather and are not part of this sequence.
            raise NotImplementedError(name)
    return x


# --------------------------- parameter creation -----------------------------

def init_mlp_params(key, in_dim, out_dim, hidden=N_HIDDEN_UNITS):
    """create_mlp(in_dim, out_dim, 128, n_layers=2); last layer zeroed per __init__."""
    ks = jax.random.split(key, 2)

    def linear(k, fan_in, fan_out):
        kw, kb = jax.random.split(k)
        bound = 1.0 / (fan_in ** 0.5)
        w = jax.random.uniform(kw, (fan_in, fan_out), jnp.float32, -bound, bound)
        b = jax.random.uniform(kb, (1, fan_out), jnp.float32, -bound, bound)
        return w, b

    w1, b1 = linear(ks[0], in_dim, hidden)
    w2, b2 = linear(ks[1], hidden, hidden)
    w3 = jnp.zeros((hidden, out_dim), jnp.float32)   # regressor[-1].weight.zero_()
    b3 = jnp.zeros((1, out_dim), jnp.float32)        # regressor[-1].bias.zero_()
    return (w1, b1, w2, b2, w3, b3)


def perturb_last_bias(params, key, scale=0.05):
    """load_with_noise-style perturbation (noise on regressor[-1].bias only) so the
    self-check exercises non-identity betas while w3 stays exactly zero."""
    w1, b1, w2, b2, w3, b3 = params
    return (w1, b1, w2, b2, w3, b3 + scale * jax.random.normal(key, b3.shape, jnp.float32))


# ------------------------- pure-JAX reference check --------------------------

def morpho_identity_buffer():
    w = jnp.full((KERNEL_SIZE, KERNEL_SIZE), -5.0, jnp.float32)
    c = KERNEL_SIZE // 2
    w = w.at[c, c].set(5.0)
    return jnp.concatenate([jnp.zeros((1,), jnp.float32), w.flatten()])


def _mlp_ref(features, params):
    w1, b1, w2, b2, w3, b3 = params
    h = jnp.maximum(features @ w1 + b1, 0.0)
    h = jnp.maximum(h @ w2 + b2, 0.0)
    return h @ w3 + b3


def _morpho_ref(x, features, params):
    B, C, H, W = x.shape
    beta = _mlp_ref(features, params) + morpho_identity_buffer()
    alpha = beta[:, 0][:, None, None, None]
    kern = jax.nn.sigmoid(beta[:, 1:])
    xpad = jnp.pad(x[:, 0], ((0, 0), (1, 1), (1, 1)))
    patches = jnp.stack(
        [xpad[:, dy:dy + H, dx:dx + W] for dy in range(3) for dx in range(3)], axis=-1)
    w = jnp.exp(alpha * patches) * kern[:, None, None, :]
    return ((patches * w).sum(-1) / w.sum(-1))[:, None]


def _color_ref(x, features, params):
    B, C, H, W = x.shape
    beta = _mlp_ref(features, params)
    x3 = jnp.broadcast_to(x, (B, COLOR_CH, H, W)) if C == 1 else x
    wb = beta.reshape(B, COLOR_CH, 2)
    eye = jnp.eye(COLOR_CH, dtype=jnp.float32)
    weight = wb[:, :, 0][:, :, None] * eye + eye
    bias = wb[:, :, 1][:, :, None, None]
    return jnp.einsum('bij,bjhw->bihw', weight, x3,
                      precision=jax.lax.Precision.HIGHEST) + bias


def transformation_sequence_ref(x, features, module_params):
    for name, params in module_params:
        if name in ("morpho", "morphological"):
            x = _morpho_ref(x, features, params)
        elif name in ("col", "color"):
            x = _color_ref(x, features, params)
    return x


# ---------------------------------- main -------------------------------------

if __name__ == "__main__":
    key = jax.random.PRNGKey(0)
    k_x, k_feat, k_m, k_c, k_nm, k_nc = jax.random.split(key, 6)

    B, H, W = 2, 16, 16
    in_channels = 32                        # feature dim fed to the regressors
    x = jax.random.uniform(k_x, (B, 1, H, W), jnp.float32)
    features = jax.random.normal(k_feat, (B, in_channels), jnp.float32)

    params_m = perturb_last_bias(
        init_mlp_params(k_m, in_channels, KERNEL_SIZE ** 2 + 1), k_nm)
    params_c = perturb_last_bias(
        init_mlp_params(k_c, in_channels, COLOR_CH * 2), k_nc)

    module_params = [
        ("id", None),
        ("morpho", params_m),
        ("col", params_c),
    ]

    out = transformation_sequence_forward(x, features, module_params)
    out = jax.block_until_ready(out)

    ref = transformation_sequence_ref(x, features, module_params)
    assert out.shape == (B, COLOR_CH, H, W), out.shape
    assert bool(jnp.allclose(out, ref, atol=1e-4, rtol=1e-4)), "mismatch vs reference"

    print("KERNEL_OK")
</pallas_src>

<mosaic_0001>
module attributes {stable_mosaic.version = 11 : i64} {
  func.func @kernel(%arg0: i32, %arg1: memref<2x32xf32, #tpu.memory_space<vmem>>, %arg2: memref<32x256xf32, #tpu.memory_space<vmem>>, %arg3: memref<1x256xf32, #tpu.memory_space<vmem>>, %arg4: memref<256x256xf32, #tpu.memory_space<vmem>>, %arg5: memref<1x256xf32, #tpu.memory_space<vmem>>, %arg6: memref<256x128xf32, #tpu.memory_space<vmem>>, %arg7: memref<1x128xf32, #tpu.memory_space<vmem>>, %arg8: memref<1x18x18xf32, #tpu.memory_space<vmem>>, %arg9: memref<1x3x16x16xf32, #tpu.memory_space<vmem>>, %arg10: memref<1x128xf32, #tpu.memory_space<vmem>>) attributes {dimension_semantics = [#tpu.dimension_semantics<parallel>], iteration_bounds = array<i64: 2>, scalar_prefetch = 0 : i64, scratch_operands = 1 : i64, tpu.core_type = #tpu.core_type<tc>, window_params = [{pipeline_mode = #tpu.pipeline_mode<synchronous>, transform_indices = @transform_0, window_bounds = array<i64: 2, 32>}, {pipeline_mode = #tpu.pipeline_mode<synchronous>, transform_indices = @transform_1, window_bounds = array<i64: 32, 256>}, {pipeline_mode = #tpu.pipeline_mode<synchronous>, transform_indices = @transform_2, window_bounds = array<i64: 1, 256>}, {pipeline_mode = #tpu.pipeline_mode<synchronous>, transform_indices = @transform_3, window_bounds = array<i64: 256, 256>}, {pipeline_mode = #tpu.pipeline_mode<synchronous>, transform_indices = @transform_4, window_bounds = array<i64: 1, 256>}, {pipeline_mode = #tpu.pipeline_mode<synchronous>, transform_indices = @transform_5, window_bounds = array<i64: 256, 128>}, {pipeline_mode = #tpu.pipeline_mode<synchronous>, transform_indices = @transform_6, window_bounds = array<i64: 1, 128>}, {transform_indices = @transform_7, window_bounds = array<i64: 1, 18, 18>}, {transform_indices = @transform_8, window_bounds = array<i64: 1, 3, 16, 16>}]} {
    %c1_i32 = arith.constant 1 : i32
    %0 = arith.muli %arg0, %c1_i32 : i32
    %1 = arith.index_cast %0 : i32 to index
    %c0 = arith.constant 0 : index
    %2 = vector.load %arg1[%1, %c0] : memref<2x32xf32, #tpu.memory_space<vmem>>, vector<1x32xf32>
    %c0_0 = arith.constant 0 : index
    %c0_1 = arith.constant 0 : index
    %3 = vector.load %arg2[%c0_0, %c0_1] : memref<32x256xf32, #tpu.memory_space<vmem>>, vector<32x256xf32>
    %cst = arith.constant dense<0.000000e+00> : vector<1x256xf32>
    %4 = tpu.matmul %2, %3, %cst {dimension_numbers = #tpu.dot_dimension_numbers<[1], [0], [0], [1], [0, 0, 1, 1], [], []>} : vector<1x32xf32>, vector<32x256xf32>, vector<1x256xf32> -> vector<1x256xf32>
    %c0_2 = arith.constant 0 : index
    %c0_3 = arith.constant 0 : index
    %5 = vector.load %arg3[%c0_2, %c0_3] : memref<1x256xf32, #tpu.memory_space<vmem>>, vector<1x256xf32>
    %6 = arith.addf %4, %5 : vector<1x256xf32>
    %cst_4 = arith.constant 0.000000e+00 : f32
    %7 = vector.broadcast %cst_4 : f32 to vector<1x256xf32>
    %8 = arith.maximumf %6, %7 : vector<1x256xf32>
    %c0_5 = arith.constant 0 : index
    %c0_6 = arith.constant 0 : index
    %9 = vector.load %arg4[%c0_5, %c0_6] : memref<256x256xf32, #tpu.memory_space<vmem>>, vector<256x256xf32>
    %cst_7 = arith.constant dense<0.000000e+00> : vector<1x256xf32>
    %10 = tpu.matmul %8, %9, %cst_7 {dimension_numbers = #tpu.dot_dimension_numbers<[1], [0], [0], [1], [0, 0, 1, 1], [], []>} : vector<1x256xf32>, vector<256x256xf32>, vector<1x256xf32> -> vector<1x256xf32>
    %c0_8 = arith.constant 0 : index
    %c0_9 = arith.constant 0 : index
    %11 = vector.load %arg5[%c0_8, %c0_9] : memref<1x256xf32, #tpu.memory_space<vmem>>, vector<1x256xf32>
    %12 = arith.addf %10, %11 : vector<1x256xf32>
    %cst_10 = arith.constant 0.000000e+00 : f32
    %13 = vector.broadcast %cst_10 : f32 to vector<1x256xf32>
    %14 = arith.maximumf %12, %13 : vector<1x256xf32>
    %c0_11 = arith.constant 0 : index
    %c0_12 = arith.constant 0 : index
    %15 = vector.load %arg6[%c0_11, %c0_12] : memref<256x128xf32, #tpu.memory_space<vmem>>, vector<256x128xf32>
    %cst_13 = arith.constant dense<0.000000e+00> : vector<1x128xf32>
    %16 = tpu.matmul %14, %15, %cst_13 {dimension_numbers = #tpu.dot_dimension_numbers<[1], [0], [0], [1], [0, 0, 1, 1], [], []>} : vector<1x256xf32>, vector<256x128xf32>, vector<1x128xf32> -> vector<1x128xf32>
    %c0_14 = arith.constant 0 : index
    %c0_15 = arith.constant 0 : index
    %17 = vector.load %arg7[%c0_14, %c0_15] : memref<1x128xf32, #tpu.memory_space<vmem>>, vector<1x128xf32>
    %18 = arith.addf %16, %17 : vector<1x128xf32>
    %19 = tpu.iota {dimensions = array<i32: 1>} : vector<1x128xi32>
    %c1_i32_16 = arith.constant 1 : i32
    %20 = vector.broadcast %c1_i32_16 : i32 to vector<1x128xi32>
    %21 = arith.cmpi sge, %19, %20 : vector<1x128xi32>
    %c10_i32 = arith.constant 10 : i32
    %22 = vector.broadcast %c10_i32 : i32 to vector<1x128xi32>
    %23 = arith.cmpi slt, %19, %22 : vector<1x128xi32>
    %24 = arith.andi %21, %23 : vector<1x128xi1>
    %c5_i32 = arith.constant 5 : i32
    %25 = vector.broadcast %c5_i32 : i32 to vector<1x128xi32>
    %26 = arith.cmpi eq, %19, %25 : vector<1x128xi32>
    %cst_17 = arith.constant 5.000000e+00 : f32
    %cst_18 = arith.constant -5.000000e+00 : f32
    %27 = vector.broadcast %cst_17 : f32 to vector<1x128xf32>
    %28 = vector.broadcast %cst_18 : f32 to vector<1x128xf32>
    %29 = arith.select %26, %27, %28 : vector<1x128xi1>, vector<1x128xf32>
    %cst_19 = arith.constant 0.000000e+00 : f32
    %30 = vector.broadcast %cst_19 : f32 to vector<1x128xf32>
    %31 = arith.select %24, %29, %30 : vector<1x128xi1>, vector<1x128xf32>
    %32 = arith.addf %18, %31 : vector<1x128xf32>
    %c10_i32_20 = arith.constant 10 : i32
    %33 = vector.broadcast %c10_i32_20 : i32 to vector<1x128xi32>
    %34 = arith.cmpi sge, %19, %33 : vector<1x128xi32>
    %c16_i32 = arith.constant 16 : i32
    %35 = vector.broadcast %c16_i32 : i32 to vector<1x128xi32>
    %36 = arith.cmpi slt, %19, %35 : vector<1x128xi32>
    %37 = arith.andi %34, %36 : vector<1x128xi1>
    %c10_i32_21 = arith.constant 10 : i32
    %38 = vector.broadcast %c10_i32_21 : i32 to vector<1x128xi32>
    %39 = arith.subi %19, %38 : vector<1x128xi32>
    %c1_i32_22 = arith.constant 1 : i32
    %40 = vector.broadcast %c1_i32_22 : i32 to vector<1x128xi32>
    %41 = arith.andi %39, %40 : vector<1x128xi32>
    %c0_i32 = arith.constant 0 : i32
    %42 = vector.broadcast %c0_i32 : i32 to vector<1x128xi32>
    %43 = arith.cmpi eq, %41, %42 : vector<1x128xi32>
    %44 = arith.andi %37, %43 : vector<1x128xi1>
    %45 = arith.negf %32 : vector<1x128xf32>
    %46 = math.exp %45 : vector<1x128xf32>
    %cst_23 = arith.constant 1.000000e+00 : f32
    %47 = vector.broadcast %cst_23 : f32 to vector<1x128xf32>
    %48 = arith.addf %47, %46 : vector<1x128xf32>
    %49 = arith.divf %47, %48 : vector<1x128xf32>
    %cst_24 = arith.constant 1.000000e+00 : f32
    %50 = vector.broadcast %cst_24 : f32 to vector<1x128xf32>
    %51 = arith.addf %32, %50 : vector<1x128xf32>
    %52 = arith.select %44, %51, %32 : vector<1x128xi1>, vector<1x128xf32>
    %53 = arith.select %24, %49, %52 : vector<1x128xi1>, vector<1x128xf32>
    %c0_25 = arith.constant 0 : index
    %c0_26 = arith.constant 0 : index
    %54 = vector.load %arg10[%c0_25, %c0_26] : memref<1x128xf32, #tpu.memory_space<vmem>>, vector<1x128xf32>
    tpu.vector_store %arg10[%c0_25, %c0_26], %53 {strides = array<i32>} : memref<1x128xf32, #tpu.memory_space<vmem>>, vector<1x128xf32>,
    %c0_27 = arith.constant 0 : index
    %c0_28 = arith.constant 0 : index
    %55 = vector.load %arg10[%c0_27, %c0_28] : memref<1x128xf32, #tpu.memory_space<vmem>>, vector<1x1xf32>
    %56 = vector.extract %55[0, 0] : f32 from vector<1x1xf32>
    %c0_29 = arith.constant 0 : index
    %c1 = arith.constant 1 : index
    %57 = vector.load %arg10[%c0_29, %c1] : memref<1x128xf32, #tpu.memory_space<vmem>>, vector<1x1xf32>
    %58 = vector.extract %57[0, 0] : f32 from vector<1x1xf32>
    %c0_30 = arith.constant 0 : index
    %c2 = arith.constant 2 : index
    %59 = vector.load %arg10[%c0_30, %c2] : memref<1x128xf32, #tpu.memory_space<vmem>>, vector<1x1xf32>
    %60 = vector.extract %59[0, 0] : f32 from vector<1x1xf32>
    %c0_31 = arith.constant 0 : index
    %c3 = arith.constant 3 : index
    %61 = vector.load %arg10[%c0_31, %c3] : memref<1x128xf32, #tpu.memory_space<vmem>>, vector<1x1xf32>
    %62 = vector.extract %61[0, 0] : f32 from vector<1x1xf32>
    %c0_32 = arith.constant 0 : index
    %c4 = arith.constant 4 : index
    %63 = vector.load %arg10[%c0_32, %c4] : memref<1x128xf32, #tpu.memory_space<vmem>>, vector<1x1xf32>
    %64 = vector.extract %63[0, 0] : f32 from vector<1x1xf32>
    %c0_33 = arith.constant 0 : index
    %c5 = arith.constant 5 : index
    %65 = vector.load %arg10[%c0_33, %c5] : memref<1x128xf32, #tpu.memory_space<vmem>>, vector<1x1xf32>
    %66 = vector.extract %65[0, 0] : f32 from vector<1x1xf32>
    %c0_34 = arith.constant 0 : index
    %c6 = arith.constant 6 : index
    %67 = vector.load %arg10[%c0_34, %c6] : memref<1x128xf32, #tpu.memory_space<vmem>>, vector<1x1xf32>
    %68 = vector.extract %67[0, 0] : f32 from vector<1x1xf32>
    %c0_35 = arith.constant 0 : index
    %c7 = arith.constant 7 : index
    %69 = vector.load %arg10[%c0_35, %c7] : memref<1x128xf32, #tpu.memory_space<vmem>>, vector<1x1xf32>
    %70 = vector.extract %69[0, 0] : f32 from vector<1x1xf32>
    %c0_36 = arith.constant 0 : index
    %c8 = arith.constant 8 : index
    %71 = vector.load %arg10[%c0_36, %c8] : memref<1x128xf32, #tpu.memory_space<vmem>>, vector<1x1xf32>
    %72 = vector.extract %71[0, 0] : f32 from vector<1x1xf32>
    %c0_37 = arith.constant 0 : index
    %c9 = arith.constant 9 : index
    %73 = vector.load %arg10[%c0_37, %c9] : memref<1x128xf32, #tpu.memory_space<vmem>>, vector<1x1xf32>
    %74 = vector.extract %73[0, 0] : f32 from vector<1x1xf32>
    %c0_38 = arith.constant 0 : index
    %c10 = arith.constant 10 : index
    %75 = vector.load %arg10[%c0_38, %c10] : memref<1x128xf32, #tpu.memory_space<vmem>>, vector<1x1xf32>
    %76 = vector.extract %75[0, 0] : f32 from vector<1x1xf32>
    %c0_39 = arith.constant 0 : index
    %c12 = arith.constant 12 : index
    %77 = vector.load %arg10[%c0_39, %c12] : memref<1x128xf32, #tpu.memory_space<vmem>>, vector<1x1xf32>
    %78 = vector.extract %77[0, 0] : f32 from vector<1x1xf32>
    %c0_40 = arith.constant 0 : index
    %c14 = arith.constant 14 : index
    %79 = vector.load %arg10[%c0_40, %c14] : memref<1x128xf32, #tpu.memory_space<vmem>>, vector<1x1xf32>
    %80 = vector.extract %79[0, 0] : f32 from vector<1x1xf32>
    %c0_41 = arith.constant 0 : index
    %c11 = arith.constant 11 : index
    %81 = vector.load %arg10[%c0_41, %c11] : memref<1x128xf32, #tpu.memory_space<vmem>>, vector<1x1xf32>
    %82 = vector.extract %81[0, 0] : f32 from vector<1x1xf32>
    %c0_42 = arith.constant 0 : index
    %c13 = arith.constant 13 : index
    %83 = vector.load %arg10[%c0_42, %c13] : memref<1x128xf32, #tpu.memory_space<vmem>>, vector<1x1xf32>
    %84 = vector.extract %83[0, 0] : f32 from vector<1x1xf32>
    %c0_43 = arith.constant 0 : index
    %c15 = arith.constant 15 : index
    %85 = vector.load %arg10[%c0_43, %c15] : memref<1x128xf32, #tpu.memory_space<vmem>>, vector<1x1xf32>
    %86 = vector.extract %85[0, 0] : f32 from vector<1x1xf32>
    %c0_44 = arith.constant 0 : index
    %c0_45 = arith.constant 0 : index
    %c0_46 = arith.constant 0 : index
    %87 = vector.load %arg8[%c0_44, %c0_45, %c0_46] : memref<1x18x18xf32, #tpu.memory_space<vmem>>, vector<1x18x18xf32>
    %88 = vector.shape_cast %87 : vector<1x18x18xf32> to vector<18x18xf32>
    %89 = vector.broadcast %56 : f32 to vector<18x18xf32>
    %90 = arith.mulf %89, %88 : vector<18x18xf32>
    %91 = math.exp %90 : vector<18x18xf32>
    %92 = vector.extract_strided_slice %88 {offsets = [0, 0], sizes = [18, 16], strides = [1, 1]} : vector<18x18xf32> to vector<18x16xf32>
    %93 = vector.extract_strided_slice %88 {offsets = [0, 1], sizes = [18, 16], strides = [1, 1]} : vector<18x18xf32> to vector<18x16xf32>
    %94 = vector.extract_strided_slice %88 {offsets = [0, 2], sizes = [18, 16], strides = [1, 1]} : vector<18x18xf32> to vector<18x16xf32>
    %95 = vector.extract_strided_slice %91 {offsets = [0, 0], sizes = [18, 16], strides = [1, 1]} : vector<18x18xf32> to vector<18x16xf32>
    %96 = vector.extract_strided_slice %91 {offsets = [0, 1], sizes = [18, 16], strides = [1, 1]} : vector<18x18xf32> to vector<18x16xf32>
    %97 = vector.extract_strided_slice %91 {offsets = [0, 2], sizes = [18, 16], strides = [1, 1]} : vector<18x18xf32> to vector<18x16xf32>
    %cst_47 = arith.constant 0.000000e+00 : f32
    %98 = vector.broadcast %cst_47 : f32 to vector<16x16xf32>
    %cst_48 = arith.constant 0.000000e+00 : f32
    %99 = vector.broadcast %cst_48 : f32 to vector<16x16xf32>
    %100 = vector.extract_strided_slice %95 {offsets = [0, 0], sizes = [16, 16], strides = [1, 1]} : vector<18x16xf32> to vector<16x16xf32>
    %101 = vector.broadcast %58 : f32 to vector<16x16xf32>
    %102 = arith.mulf %100, %101 : vector<16x16xf32>
    %103 = vector.extract_strided_slice %92 {offsets = [0, 0], sizes = [16, 16], strides = [1, 1]} : vector<18x16xf32> to vector<16x16xf32>
    %104 = arith.mulf %103, %102 : vector<16x16xf32>
    %105 = arith.addf %98, %104 : vector<16x16xf32>
    %106 = arith.addf %99, %102 : vector<16x16xf32>
    %107 = vector.extract_strided_slice %96 {offsets = [0, 0], sizes = [16, 16], strides = [1, 1]} : vector<18x16xf32> to vector<16x16xf32>
    %108 = vector.broadcast %60 : f32 to vector<16x16xf32>
    %109 = arith.mulf %107, %108 : vector<16x16xf32>
    %110 = vector.extract_strided_slice %93 {offsets = [0, 0], sizes = [16, 16], strides = [1, 1]} : vector<18x16xf32> to vector<16x16xf32>
    %111 = arith.mulf %110, %109 : vector<16x16xf32>
    %112 = arith.addf %105, %111 : vector<16x16xf32>
    %113 = arith.addf %106, %109 : vector<16x16xf32>
    %114 = vector.extract_strided_slice %97 {offsets = [0, 0], sizes = [16, 16], strides = [1, 1]} : vector<18x16xf32> to vector<16x16xf32>
    %115 = vector.broadcast %62 : f32 to vector<16x16xf32>
    %116 = arith.mulf %114, %115 : vector<16x16xf32>
    %117 = vector.extract_strided_slice %94 {offsets = [0, 0], sizes = [16, 16], strides = [1, 1]} : vector<18x16xf32> to vector<16x16xf32>
    %118 = arith.mulf %117, %116 : vector<16x16xf32>
    %119 = arith.addf %112, %118 : vector<16x16xf32>
    %120 = arith.addf %113, %116 : vector<16x16xf32>
    %121 = vector.extract_strided_slice %95 {offsets = [1, 0], sizes = [16, 16], strides = [1, 1]} : vector<18x16xf32> to vector<16x16xf32>
    %122 = vector.broadcast %64 : f32 to vector<16x16xf32>
    %123 = arith.mulf %121, %122 : vector<16x16xf32>
    %124 = vector.extract_strided_slice %92 {offsets = [1, 0], sizes = [16, 16], strides = [1, 1]} : vector<18x16xf32> to vector<16x16xf32>
    %125 = arith.mulf %124, %123 : vector<16x16xf32>
    %126 = arith.addf %119, %125 : vector<16x16xf32>
    %127 = arith.addf %120, %123 : vector<16x16xf32>
    %128 = vector.extract_strided_slice %96 {offsets = [1, 0], sizes = [16, 16], strides = [1, 1]} : vector<18x16xf32> to vector<16x16xf32>
    %129 = vector.broadcast %66 : f32 to vector<16x16xf32>
    %130 = arith.mulf %128, %129 : vector<16x16xf32>
    %131 = vector.extract_strided_slice %93 {offsets = [1, 0], sizes = [16, 16], strides = [1, 1]} : vector<18x16xf32> to vector<16x16xf32>
    %132 = arith.mulf %131, %130 : vector<16x16xf32>
    %133 = arith.addf %126, %132 : vector<16x16xf32>
    %134 = arith.addf %127, %130 : vector<16x16xf32>
    %135 = vector.extract_strided_slice %97 {offsets = [1, 0], sizes = [16, 16], strides = [1, 1]} : vector<18x16xf32> to vector<16x16xf32>
    %136 = vector.broadcast %68 : f32 to vector<16x16xf32>
    %137 = arith.mulf %135, %136 : vector<16x16xf32>
    %138 = vector.extract_strided_slice %94 {offsets = [1, 0], sizes = [16, 16], strides = [1, 1]} : vector<18x16xf32> to vector<16x16xf32>
    %139 = arith.mulf %138, %137 : vector<16x16xf32>
    %140 = arith.addf %133, %139 : vector<16x16xf32>
    %141 = arith.addf %134, %137 : vector<16x16xf32>
    %142 = vector.extract_strided_slice %95 {offsets = [2, 0], sizes = [16, 16], strides = [1, 1]} : vector<18x16xf32> to vector<16x16xf32>
    %143 = vector.broadcast %70 : f32 to vector<16x16xf32>
    %144 = arith.mulf %142, %143 : vector<16x16xf32>
    %145 = vector.extract_strided_slice %92 {offsets = [2, 0], sizes = [16, 16], strides = [1, 1]} : vector<18x16xf32> to vector<16x16xf32>
    %146 = arith.mulf %145, %144 : vector<16x16xf32>
    %147 = arith.addf %140, %146 : vector<16x16xf32>
    %148 = arith.addf %141, %144 : vector<16x16xf32>
    %149 = vector.extract_strided_slice %96 {offsets = [2, 0], sizes = [16, 16], strides = [1, 1]} : vector<18x16xf32> to vector<16x16xf32>
    %150 = vector.broadcast %72 : f32 to vector<16x16xf32>
    %151 = arith.mulf %149, %150 : vector<16x16xf32>
    %152 = vector.extract_strided_slice %93 {offsets = [2, 0], sizes = [16, 16], strides = [1, 1]} : vector<18x16xf32> to vector<16x16xf32>
    %153 = arith.mulf %152, %151 : vector<16x16xf32>
    %154 = arith.addf %147, %153 : vector<16x16xf32>
    %155 = arith.addf %148, %151 : vector<16x16xf32>
    %156 = vector.extract_strided_slice %97 {offsets = [2, 0], sizes = [16, 16], strides = [1, 1]} : vector<18x16xf32> to vector<16x16xf32>
    %157 = vector.broadcast %74 : f32 to vector<16x16xf32>
    %158 = arith.mulf %156, %157 : vector<16x16xf32>
    %159 = vector.extract_strided_slice %94 {offsets = [2, 0], sizes = [16, 16], strides = [1, 1]} : vector<18x16xf32> to vector<16x16xf32>
    %160 = arith.mulf %159, %158 : vector<16x16xf32>
    %161 = arith.addf %154, %160 : vector<16x16xf32>
    %162 = arith.addf %155, %158 : vector<16x16xf32>
    %163 = tpu.reciprocal %162 {approx = true} : vector<16x16xf32> -> vector<16x16xf32>
    %164 = arith.mulf %162, %163 : vector<16x16xf32>
    %cst_49 = arith.constant 2.000000e+00 : f32
    %165 = vector.broadcast %cst_49 : f32 to vector<16x16xf32>
    %166 = arith.subf %165, %164 : vector<16x16xf32>
    %167 = arith.mulf %163, %166 : vector<16x16xf32>
    %168 = arith.mulf %161, %167 : vector<16x16xf32>
    %169 = vector.broadcast %76 : f32 to vector<16x16xf32>
    %170 = arith.mulf %169, %168 : vector<16x16xf32>
    %171 = vector.broadcast %82 : f32 to vector<16x16xf32>
    %172 = arith.addf %170, %171 : vector<16x16xf32>
    %c0_50 = arith.constant 0 : index
    %c0_51 = arith.constant 0 : index
    %c0_52 = arith.constant 0 : index
    %c0_53 = arith.constant 0 : index
    %173 = vector.load %arg9[%c0_50, %c0_51, %c0_52, %c0_53] : memref<1x3x16x16xf32, #tpu.memory_space<vmem>>, vector<1x1x16x16xf32>
    %174 = vector.shape_cast %173 : vector<1x1x16x16xf32> to vector<16x16xf32>
    %175 = vector.shape_cast %172 : vector<16x16xf32> to vector<1x1x16x16xf32>
    tpu.vector_store %arg9[%c0_50, %c0_51, %c0_52, %c0_53], %175 {strides = array<i32>} : memref<1x3x16x16xf32, #tpu.memory_space<vmem>>, vector<1x1x16x16xf32>,
    %176 = vector.broadcast %78 : f32 to vector<16x16xf32>
    %177 = arith.mulf %176, %168 : vector<16x16xf32>
    %178 = vector.broadcast %84 : f32 to vector<16x16xf32>
    %179 = arith.addf %177, %178 : vector<16x16xf32>
    %c0_54 = arith.constant 0 : index
    %c1_55 = arith.constant 1 : index
    %c0_56 = arith.constant 0 : index
    %c0_57 = arith.constant 0 : index
    %180 = vector.load %arg9[%c0_54, %c1_55, %c0_56, %c0_57] : memref<1x3x16x16xf32, #tpu.memory_space<vmem>>, vector<1x1x16x16xf32>
    %181 = vector.shape_cast %180 : vector<1x1x16x16xf32> to vector<16x16xf32>
    %182 = vector.shape_cast %179 : vector<16x16xf32> to vector<1x1x16x16xf32>
    tpu.vector_store %arg9[%c0_54, %c1_55, %c0_56, %c0_57], %182 {strides = array<i32>} : memref<1x3x16x16xf32, #tpu.memory_space<vmem>>, vector<1x1x16x16xf32>,
    %183 = vector.broadcast %80 : f32 to vector<16x16xf32>
    %184 = arith.mulf %183, %168 : vector<16x16xf32>
    %185 = vector.broadcast %86 : f32 to vector<16x16xf32>
    %186 = arith.addf %184, %185 : vector<16x16xf32>
    %c0_58 = arith.constant 0 : index
    %c2_59 = arith.constant 2 : index
    %c0_60 = arith.constant 0 : index
    %c0_61 = arith.constant 0 : index
    %187 = vector.load %arg9[%c0_58, %c2_59, %c0_60, %c0_61] : memref<1x3x16x16xf32, #tpu.memory_space<vmem>>, vector<1x1x16x16xf32>
    %188 = vector.shape_cast %187 : vector<1x1x16x16xf32> to vector<16x16xf32>
    %189 = vector.shape_cast %186 : vector<16x16xf32> to vector<1x1x16x16xf32>
    tpu.vector_store %arg9[%c0_58, %c2_59, %c0_60, %c0_61], %189 {strides = array<i32>} : memref<1x3x16x16xf32, #tpu.memory_space<vmem>>, vector<1x1x16x16xf32>,
    return
  }
  func.func @transform_0(%arg0: i32) -> (i32, i32) {
    %c0_i32 = arith.constant 0 : i32
    %c0_i32_0 = arith.constant 0 : i32
    %c0_i32_1 = arith.constant 0 : i32
    return %c0_i32, %c0_i32_0 : i32, i32
  }
  func.func @transform_1(%arg0: i32) -> (i32, i32) {
    %c0_i32 = arith.constant 0 : i32
    %c0_i32_0 = arith.constant 0 : i32
    %c0_i32_1 = arith.constant 0 : i32
    return %c0_i32, %c0_i32_0 : i32, i32
  }
  func.func @transform_2(%arg0: i32) -> (i32, i32) {
    %c0_i32 = arith.constant 0 : i32
    %c0_i32_0 = arith.constant 0 : i32
    %c0_i32_1 = arith.constant 0 : i32
    return %c0_i32, %c0_i32_0 : i32, i32
  }
  func.func @transform_3(%arg0: i32) -> (i32, i32) {
    %c0_i32 = arith.constant 0 : i32
    %c0_i32_0 = arith.constant 0 : i32
    %c0_i32_1 = arith.constant 0 : i32
    return %c0_i32, %c0_i32_0 : i32, i32
  }
  func.func @transform_4(%arg0: i32) -> (i32, i32) {
    %c0_i32 = arith.constant 0 : i32
    %c0_i32_0 = arith.constant 0 : i32
    %c0_i32_1 = arith.constant 0 : i32
    return %c0_i32, %c0_i32_0 : i32, i32
  }
  func.func @transform_5(%arg0: i32) -> (i32, i32) {
    %c0_i32 = arith.constant 0 : i32
    %c0_i32_0 = arith.constant 0 : i32
    %c0_i32_1 = arith.constant 0 : i32
    return %c0_i32, %c0_i32_0 : i32, i32
  }
  func.func @transform_6(%arg0: i32) -> (i32, i32) {
    %c0_i32 = arith.constant 0 : i32
    %c0_i32_0 = arith.constant 0 : i32
    %c0_i32_1 = arith.constant 0 : i32
    return %c0_i32, %c0_i32_0 : i32, i32
  }
  func.func @transform_7(%arg0: i32) -> (i32, i32, i32) {
    %c0_i32 = arith.constant 0 : i32
    %c0_i32_0 = arith.constant 0 : i32
    %c0_i32_1 = arith.constant 0 : i32
    return %arg0, %c0_i32, %c0_i32_0 : i32, i32, i32
  }
  func.func @transform_8(%arg0: i32) -> (i32, i32, i32, i32) {
    %c0_i32 = arith.constant 0 : i32
    %c0_i32_0 = arith.constant 0 : i32
    %c0_i32_1 = arith.constant 0 : i32
    %c0_i32_2 = arith.constant 0 : i32
    return %arg0, %c0_i32, %c0_i32_0, %c0_i32_1 : i32, i32, i32, i32
  }
}

</mosaic_0001>

<bundles_post_ra>
// kernel: tpu_custom_call.1
= control target key start
LH: loop header
LB: loop body
LE: loop exit
PB: predicated region body
PF: predicated region fallthrough
CT: control target
= control target key end

     0   :  { %13 = vsyncpa [#allocation4], 0  ;;  %s2115_s0 = inlined_call_operand.vmem [shape: f32[2,32], index: 0, kind: input, shape index: {}]   ;;  %s2116_s1 = inlined_call_operand.vmem [shape: f32[32,256], index: 1, kind: input, shape index: {}]   ;;  %s2117_s2 = inlined_call_operand.vmem [shape: f32[1,256], index: 2, kind: input, shape index: {}]   ;;  %s2118_s3 = inlined_call_operand.hbm [shape: f32[256,256], index: 3, kind: input, shape index: {}]   ;;  %s2119_s4 = inlined_call_operand.vmem [shape: f32[1,256], index: 4, kind: input, shape index: {}]   ;;  %s2120_s5 = inlined_call_operand.hbm [shape: f32[256,128], index: 5, kind: input, shape index: {}]   ;;  %s2121_s6 = inlined_call_operand.vmem [shape: f32[1,128], index: 6, kind: input, shape index: {}]   ;;  %s2122_s7 = inlined_call_operand.vmem [shape: f32[2,18,18], index: 7, kind: input, shape index: {}]   ;;  %s2123_s8 = inlined_call_operand.hbm [shape: f32[2,3,16,16], index: 8, kind: output, shape index: {}]  }
   0x1   :  { %14 = vsyncpa [#allocation7], 0 }
   0x2   :  { %15 = vsyncpa [#allocation5], 0 }
   0x3   :  { %17 = vsyncpa [#allocation5 + $0x1], 0  ;;  %s1691_s27 = smov 0   ;;  %s1693_s28 = smov 0  }
   0x4   :  { %s1695_s29 = smov 0   ;;  %s1697_s30 = smov 0  }
   0x5 LB: > { %2128 = sst [smem:[#allocation12_spill]] %s1614_s29  ;;  %s1712_s9 = sadd.s32 4294967295, %s1618_s30   ;;  %s1618_s30 = sphi %s1697_s30, %s2147_s30   ;;  %s1614_s29 = sphi %s1695_s29, %s2144_s29   ;;  %s1610_s28 = sphi %s1693_s28, %s2146_s28   ;;  %s1606_s27 = sphi %s1691_s27, %s2145_s27  }
   0x6   : > { %s1202_s10 = sadd.s32 4294967294, %s1618_s30   ;;  %s1716_s11 = sadd.s32 1, %s1618_s30  }
   0x7   : > { %s203_s12 = sadd.s32 1, %s1614_s29  ;;  %s200_s13 = ssub.s32 %s1618_s30, %s1716_s11 }
   0x8   : > { %p213_p0 = scmp.ne.s32.totalorder %s1614_s29, %s1610_s28  ;;  %p201_p1 = scmp.eq.s32.totalorder %s200_s13, 0 }
   0x9   : > { %p214_p2 = scmp.eq.s32.totalorder %s1712_s9, 1  ;;  %p219_p3 = scmp.ne.s32.totalorder %s1610_s28, %s1606_s27 }
   0xa   : > { %p220_p4 = scmp.eq.s32.totalorder %s1202_s10, 1  ;;  %p1203_p7 = scmp.ge.s32.totalorder %s1618_s30, 1 }
   0xb   : > { %s1727_s14 = scalar_select %p201_p1, %s1614_s29, %s203_s12  }
   0xc   : > { %p1729_p5 = por %p214_p2, %p213_p0  ;;  %p1733_p6 = por %p220_p4, %p219_p3 }
   0xd   : > { %2129 = sst [smem:[#allocation13_spill]] %s1727_s14  ;;  %p227_p8 = scmp.lt.s32.totalorder %s1618_s30, 3 }
   0xe   : > { %s2130_s15 = scalar_select %p1729_p5, 1, 0 }
   0xf   : > { %s2131_s16 = scalar_select %p1733_p6, 1, 0 }
  0x10   : > { %p2124_p9 = scmp.eq.s32.totalorder %s1712_s9, 0  ;;  %p1740_p10 = pnand %p1203_p7, %p227_p8 }
  0x11   : > { %s1620_s18 = smov [#allocation3]   ;;  %s1621_s21 = smov [#allocation6]  }
  0x12   : > { %s2132_s17 = scalar_select %p1740_p10, 1, 0 }
  0x13   : > { %s248_s19 = sshll.u32 %s1620_s18, 4  ;;  %p1405_p11 = pneg %p1740_p10  ;;  %s249_s19 = int_to_ptr.vmem [resolvable:$true] %s248_s19 }
  0x14   : > { %s264_s22 = sshll.u32 %s1621_s21, 4  ;;  %s1492_s25 = scalar_lea.hbm %s2118_s3, 8192  ;;  %s1752_s22 = int_to_ptr.vmem [resolvable:$true] %s264_s22 }
  0x15   : > { %p1748_p12 = pnand %p2124_p9, %p1405_p11  ;;  %p1493_p13 = scmp.ne.s32.totalorder %s2118_s3, %s1492_s25 }
  0x16   : > { %p1499_p3 = scmp.lt.u32.totalorder %s1492_s25, %s2118_s3 }
  0x17   : > { %p1494_p0 = pneg %p1748_p12 }
  0x19   : > { %p1495_p1 = pnand %p1494_p0, %p1493_p13 }
  0x1b   : > { %p1496_p2 = pneg %p1495_p1 }
  0x1d   : > { %p1501_p4 = pnand %p1499_p3, %p1496_p2 }
  0x1f   : > { %1504 = shalt.err (!%p1501_p4)
}
  0x20   : > { %s1505_s18 = scalar_lea.vmem %s249_s19, 8192  ;;  %p1513_p9 = scmp.lt.s32.totalorder %s249_s19, %s249_s19 }
  0x21   : > { %p1506_p7 = scmp.ne.s32.totalorder %s249_s19, %s1505_s18  ;;  %p1514_p6 = scmp.lt.s32.totalorder %s1505_s18, %s1505_s18 }
  0x23   : > { %p1508_p8 = pnand %p1506_p7, %p1494_p0  ;;  %p1515_p5 = por %p1514_p6, %p1513_p9 }
  0x25   : > { %p1509_p11 = pneg %p1508_p8 }
  0x27   : > { %p1516_p10 = pnand %p1515_p5, %p1509_p11 }
  0x29   : > { %1519 = shalt.err (!%p1516_p10)
}
  0x2a   : > { %s1622_s21 = smov 256   ;;  %s1623_s23 = smov 16  }
  0x2b   : > { %1408 = dma.hbm_to_vmem [thread:$0]  (!%p1748_p12), %s2118_s3, 8192, %s249_s19, [#allocation4], %s1622_s21, %s1622_s21, %s1623_s23  }
  0x2c   : > { %s1520_s12 = scalar_lea.hbm %s2120_s5, 4096 }
  0x2d   : > { %p1521_p13 = scmp.ne.s32.totalorder %s2120_s5, %s1520_s12  ;;  %p1527_p9 = scmp.lt.u32.totalorder %s1520_s12, %s2120_s5 }
  0x2f   : > { %p1523_p5 = pnand %p1521_p13, %p1494_p0 }
  0x31   : > { %p1524_p6 = pneg %p1523_p5 }
  0x33   : > { %p1529_p10 = pnand %p1527_p9, %p1524_p6 }
  0x35   : > { %1532 = shalt.err (!%p1529_p10)
}
  0x36   : > { %s1533_s19 = scalar_lea.vmem %s1752_s22, 4096  ;;  %p1541_p4 = scmp.lt.s32.totalorder %s1752_s22, %s1752_s22 }
  0x37   : > { %p1534_p1 = scmp.ne.s32.totalorder %s1752_s22, %s1533_s19  ;;  %p1542_p7 = scmp.lt.s32.totalorder %s1533_s19, %s1533_s19 }
  0x39   : > { %p1536_p2 = pnand %p1534_p1, %p1494_p0  ;;  %p1543_p8 = por %p1542_p7, %p1541_p4 }
  0x3b   : > { %p1537_p3 = pneg %p1536_p2 }
  0x3d   : > { %p1544_p11 = pnand %p1543_p8, %p1537_p3 }
  0x3f   : > { %1547 = shalt.err (!%p1544_p11)
}
  0x40   : > { %s1624_s29 = smov 128   ;;  %s1625_s14 = smov 8  }
  0x41   : > { %1411 = dma.hbm_to_vmem [thread:$0]  (!%p1748_p12), %s2120_s5, 4096, %s1752_s22, [#allocation7], %s1624_s29, %s1624_s29, %s1625_s14  }
  0x42   : > { %p2134_p13 = scmp.ne.s32.totalorder %s2132_s17, 0 }
  0x43   : > { %p2135_p0 = scmp.eq.s32.totalorder (!%p2134_p13), %s1712_s9, 0 }
  0x44   : > { %291 = sbr.rel (%p2134_p13) target bundleno = 1136 (0x470), region = 52 }
  0x4b   : > { %1593 = dma.done.wait (%p2135_p0), [#allocation4], 8192   ;;  %p2136_p5 = pmov %p2135_p0 }
  0x4c   : > { %p2137_p6 = pmov %p2135_p0 }
  0x4d   : > { %1595 = vsyncadd (%p2136_p5), [#allocation4], 4294959104 }
  0x4e   : > { %1597 = dma.done.wait (%p2137_p6), [#allocation7], 4096   ;;  %p2138_p9 = pmov %p2135_p0 }
  0x4f   : > { %v1626_v0 = vmov 0.0   ;;  %v337_v1 = vld [vmem:[%s2116_s1 + $0x8] sm:$0xff]  ;;  %v339_v2 = vld [vmem:[%s2116_s1 + $0x18] sm:$0xff]  ;;  %v336_v3 = vld [vmem:[%s2116_s1] sm:$0xff]  ;;  %s334_s22 = scalar_lea.vmem %s2115_s0, %s1712_s9  ;;  %vm356_vm0 = vcmask 261120   ;;  %s1628_s19 = smov 125  }
  0x50   : > { %1599 = vsyncadd (%p2138_p9), [#allocation7], 4294963200  ;;  %424 = vmatprep.mubr.f32.mxu0 %v1626_v0  ;;  %v1256_v4 = vpack.c.bf16 %v339_v2, %v337_v1  ;;  %v338_v5 = vld [vmem:[%s2116_s1 + $0x10] sm:$0xff]  ;;  %v341_v6 = vld [vmem:[%s2116_s1 + $0x28] sm:$0xff]  ;;  %s1629_s29 = smov 127   ;;  %s1630_s14 = smov 124  }
  0x51   : > { %v343_v7 = vld [vmem:[%s2116_s1 + $0x38] sm:$0xff]  ;;  %v1258_v8 = vpack.c.bf16 %v338_v5, %v336_v3  ;;  %v340_v10 = vld [vmem:[%s2116_s1 + $0x20] sm:$0xff]  ;;  %v342_v11 = vld [vmem:[%s2116_s1 + $0x30] sm:$0xff]  ;;  %s1631_s21 = smov 126   ;;  %s1632_s23 = smov 122   ;;  %vm856_vm10 = vcmask 1046528  }
  0x52   : > { %v1260_v9 = vpack.c.bf16 %v343_v7, %v341_v6  ;;  %1257 = vmatprep.subr.bf16.mxu0 %v1256_v4  ;;  %v434_v12 = vld [vmem:[#allocation3 + $0x8] sm:$0xff]  ;;  %v436_v13 = vld [vmem:[#allocation3 + $0x18] sm:$0xff]  ;;  %v433_v14 = vld [vmem:[#allocation3] sm:$0xff]  ;;  %v1262_v15 = vpack.c.bf16 %v342_v11, %v340_v10  ;;  %s1633_s20 = smov 123   ;;  %s1634_s24 = smov 120   ;;  %vm966_vm11 = vcmask 1045504  }
  0x53   : > { %1259 = vmatpush1.bf16.msra.mxu0 %v1258_v8  ;;  %v1264_v16 = vpack.c.bf16 %v436_v13, %v434_v12  ;;  %v435_v17 = vld [vmem:[#allocation3 + $0x10] sm:$0xff]  ;;  %v438_v18 = vld [vmem:[#allocation3 + $0x28] sm:$0xff]  ;;  %v440_v19 = vld [vmem:[#allocation3 + $0x38] sm:$0xff]  ;;  %s1635_s17 = smov 121   ;;  %s1637_s25 = smov 119   ;;  %vm1082_vm12 = vcmask 130048  }
  0x54   : > { %1261 = vmatprep.subr.bf16.mxu0 %v1260_v9  ;;  %v1266_v20 = vpack.c.bf16 %v435_v17, %v433_v14  ;;  %v1268_v21 = vpack.c.bf16 %v440_v19, %v438_v18  ;;  %v437_v22 = vld [vmem:[#allocation3 + $0x20] sm:$0xff]  ;;  %v439_v23 = vld [vmem:[#allocation3 + $0x30] sm:$0xff]  ;;  %v442_v24 = vld [vmem:[#allocation3 + $0x48] sm:$0xff]  ;;  %s1638_s26 = smov 114   ;;  %s1639_s10 = smov 116  }
  0x55   : > { %1265 = vmatprep.subr.bf16.mxu1 %v1264_v16  ;;  %v444_v25 = vld [vmem:[#allocation3 + $0x58] sm:$0xff]  ;;  %v1270_v26 = vpack.c.bf16 %v439_v23, %v437_v22  ;;  %v441_v29 = vld [vmem:[#allocation3 + $0x40] sm:$0xff]  ;;  %v443_v30 = vld [vmem:[#allocation3 + $0x50] sm:$0xff]  ;;  %s1640_s12 = smov 115   ;;  %s1641_s13 = smov 117  }
  0x56   : > { %1267 = vmatpush1.bf16.msra.mxu1 %v1266_v20  ;;  %v335_v27 = vld [vmem:[%s334_s22] sm:$0x1]  ;;  %v1272_v28 = vpack.c.bf16 %v444_v25, %v442_v24  ;;  %v446_v31 = vld [vmem:[#allocation3 + $0x68] sm:$0xff]  ;;  %v1274_v33 = vpack.c.bf16 %v443_v30, %v441_v29  ;;  %v445_v35 = vld [vmem:[#allocation3 + $0x60] sm:$0xff]  ;;  %s1636_s22 = smov 118   ;;  %s1642_s18 = smov 113  }
  0x57   : > { %1263 = vmatpush1.bf16.msra.mxu0 %v1262_v15  ;;  %1269 = vmatprep.subr.bf16.mxu1 %v1268_v21  ;;  %v448_v32 = vld [vmem:[#allocation3 + $0x78] sm:$0xff]  ;;  %v447_v36 = vld [vmem:[#allocation3 + $0x70] sm:$0xff]  ;;  %v450_v37 = vld [vmem:[#allocation3 + $0x88] sm:$0xff]  ;;  %p329_p12 = scmp.lt.s32.totalorder %s1712_s9, 1  ;;  %p2141_p1 = scmp.ne.s32.totalorder %s2130_s15, 0 }
  0x58   : > { %v1276_v34 = vpack.c.bf16 %v448_v32, %v446_v31  ;;  %v452_v38 = vld [vmem:[#allocation3 + $0x98] sm:$0xff]  ;;  %v1278_v39 = vpack.c.bf16 %v447_v36, %v445_v35  ;;  %v449_v41 = vld [vmem:[#allocation3 + $0x80] sm:$0xff]  ;;  %v451_v42 = vld [vmem:[#allocation3 + $0x90] sm:$0xff] }
  0x59   : > { %v1280_v40 = vpack.c.bf16 %v452_v38, %v450_v37  ;;  %v454_v43 = vld [vmem:[#allocation3 + $0xa8] sm:$0xff]  ;;  %v456_v44 = vld [vmem:[#allocation3 + $0xb8] sm:$0xff]  ;;  %v1282_v45 = vpack.c.bf16 %v451_v42, %v449_v41  ;;  %v453_v47 = vld [vmem:[#allocation3 + $0xa0] sm:$0xff] }
  0x5a   : > { %1211 = vmatmul.mubr.msk.f32.vlgmr.msra.gmra.mrb[0].mxu0 %vm356_vm0, %v335_v27  ;;  %1271 = vmatpush1.bf16.msra.mxu1 %v1270_v26  ;;  %v1284_v46 = vpack.c.bf16 %v456_v44, %v454_v43  ;;  %v455_v48 = vld [vmem:[#allocation3 + $0xb0] sm:$0xff]  ;;  %v458_v49 = vld [vmem:[#allocation3 + $0xc8] sm:$0xff]  ;;  %v460_v50 = vld [vmem:[#allocation3 + $0xd8] sm:$0xff] }
  0x5b   : > { %1273 = vmatprep.subr.bf16.mxu1 %v1272_v28  ;;  %v1286_v51 = vpack.c.bf16 %v455_v48, %v453_v47  ;;  %v1288_v52 = vpack.c.bf16 %v460_v50, %v458_v49  ;;  %v457_v53 = vld [vmem:[#allocation3 + $0xc0] sm:$0xff]  ;;  %v459_v54 = vld [vmem:[#allocation3 + $0xd0] sm:$0xff]  ;;  %v462_v55 = vld [vmem:[#allocation3 + $0xe8] sm:$0xff] }
  0x5c   : > { %v464_v56 = vld [vmem:[#allocation3 + $0xf8] sm:$0xff]  ;;  %v1290_v57 = vpack.c.bf16 %v459_v54, %v457_v53  ;;  %v461_v59 = vld [vmem:[#allocation3 + $0xe0] sm:$0xff]  ;;  %v463_v60 = vld [vmem:[#allocation3 + $0xf0] sm:$0xff] }
  0x5d   : > { %v1292_v58 = vpack.c.bf16 %v464_v56, %v462_v55  ;;  %v466_v61 = vld [vmem:[#allocation3 + $0x108] sm:$0xff]  ;;  %v468_v62 = vld [vmem:[#allocation3 + $0x118] sm:$0xff]  ;;  %v1294_v63 = vpack.c.bf16 %v463_v60, %v461_v59  ;;  %v465_v1 = vld [vmem:[#allocation3 + $0x100] sm:$0xff] }
  0x5e   : > { %1275 = vmatpush1.bf16.msra.mxu1 %v1274_v33  ;;  %v1296_v0 = vpack.c.bf16 %v468_v62, %v466_v61  ;;  %v467_v2 = vld [vmem:[#allocation3 + $0x110] sm:$0xff]  ;;  %v470_v3 = vld [vmem:[#allocation3 + $0x128] sm:$0xff]  ;;  %v472_v4 = vld [vmem:[#allocation3 + $0x138] sm:$0xff] }
  0x5f   : > { %1277 = vmatprep.subr.bf16.mxu1 %v1276_v34  ;;  %v1298_v5 = vpack.c.bf16 %v467_v2, %v465_v1  ;;  %v1300_v6 = vpack.c.bf16 %v472_v4, %v470_v3  ;;  %v469_v7 = vld [vmem:[#allocation3 + $0x120] sm:$0xff]  ;;  %v471_v8 = vld [vmem:[#allocation3 + $0x130] sm:$0xff]  ;;  %v474_v9 = vld [vmem:[#allocation3 + $0x148] sm:$0xff] }
  0x60   : > { %v476_v10 = vld [vmem:[#allocation3 + $0x158] sm:$0xff]  ;;  %v1302_v11 = vpack.c.bf16 %v471_v8, %v469_v7  ;;  %v473_v13 = vld [vmem:[#allocation3 + $0x140] sm:$0xff]  ;;  %v475_v14 = vld [vmem:[#allocation3 + $0x150] sm:$0xff] }
  0x61   : > { %v1304_v12 = vpack.c.bf16 %v476_v10, %v474_v9  ;;  %v478_v15 = vld [vmem:[#allocation3 + $0x168] sm:$0xff]  ;;  %v480_v16 = vld [vmem:[#allocation3 + $0x178] sm:$0xff]  ;;  %v1306_v17 = vpack.c.bf16 %v475_v14, %v473_v13  ;;  %v477_v19 = vld [vmem:[#allocation3 + $0x160] sm:$0xff] }
  0x62   : > { %1279 = vmatpush1.bf16.msra.mxu1 %v1278_v39  ;;  %v1308_v18 = vpack.c.bf16 %v480_v16, %v478_v15  ;;  %v479_v20 = vld [vmem:[#allocation3 + $0x170] sm:$0xff]  ;;  %v482_v21 = vld [vmem:[#allocation3 + $0x188] sm:$0xff]  ;;  %v484_v22 = vld [vmem:[#allocation3 + $0x198] sm:$0xff] }
  0x63   : > { %1281 = vmatprep.subr.bf16.mxu1 %v1280_v40  ;;  %v1310_v23 = vpack.c.bf16 %v479_v20, %v477_v19  ;;  %v1312_v24 = vpack.c.bf16 %v484_v22, %v482_v21  ;;  %v481_v25 = vld [vmem:[#allocation3 + $0x180] sm:$0xff]  ;;  %v483_v26 = vld [vmem:[#allocation3 + $0x190] sm:$0xff]  ;;  %v486_v27 = vld [vmem:[#allocation3 + $0x1a8] sm:$0xff]  ;;  %v346_v21 = vlaneseq }
  0x64   : > { %v488_v28 = vld [vmem:[#allocation3 + $0x1b8] sm:$0xff]  ;;  %v1314_v29 = vpack.c.bf16 %v483_v26, %v481_v25  ;;  %v485_v31 = vld [vmem:[#allocation3 + $0x1a0] sm:$0xff]  ;;  %v487_v32 = vld [vmem:[#allocation3 + $0x1b0] sm:$0xff] }
  0x65   : > { %v1316_v30 = vpack.c.bf16 %v488_v28, %v486_v27  ;;  %v490_v33 = vld [vmem:[#allocation3 + $0x1c8] sm:$0xff]  ;;  %v492_v34 = vld [vmem:[#allocation3 + $0x1d8] sm:$0xff]  ;;  %v1318_v35 = vpack.c.bf16 %v487_v32, %v485_v31  ;;  %v489_v37 = vld [vmem:[#allocation3 + $0x1c0] sm:$0xff]  ;;  %v347_v22 = vshrl.u32 %v346_v21, 7 }
  0x66   : > { %1283 = vmatpush1.bf16.msra.mxu1 %v1282_v45  ;;  %v1320_v36 = vpack.c.bf16 %v492_v34, %v490_v33  ;;  %v491_v38 = vld [vmem:[#allocation3 + $0x1d0] sm:$0xff]  ;;  %v494_v40 = vld [vmem:[#allocation3 + $0x1e8] sm:$0xff]  ;;  %v496_v41 = vld [vmem:[#allocation3 + $0x1f8] sm:$0xff] }
  0x67   : > { %1285 = vmatprep.subr.bf16.mxu1 %v1284_v46  ;;  %v1322_v39 = vpack.c.bf16 %v491_v38, %v489_v37  ;;  %v1324_v42 = vpack.c.bf16 %v496_v41, %v494_v40  ;;  %v493_v43 = vld [vmem:[#allocation3 + $0x1e0] sm:$0xff]  ;;  %v495_v44 = vld [vmem:[#allocation3 + $0x1f0] sm:$0xff]  ;;  %v599_v47 = vld [vmem:[#allocation6 + $0x88] sm:$0xff]  ;;  %v352_v25 = vsub.s32 1, %v347_v22 }
  0x68   : > { %v1326_v45 = vpack.c.bf16 %v495_v44, %v493_v43  ;;  %v598_v46 = vld [vmem:[#allocation6 + $0x80] sm:$0xff]  ;;  %v583_v50 = vld [vmem:[#allocation6 + $0x8] sm:$0xff]  ;;  %v584_v55 = vld [vmem:[#allocation6 + $0x10] sm:$0xff] }
  0x69   : > { %v582_v48 = vld [vmem:[#allocation6] sm:$0xff]  ;;  %v1328_v49 = vpack.c.bf16 %v599_v47, %v598_v46  ;;  %v585_v56 = vld [vmem:[#allocation6 + $0x18] sm:$0xff]  ;;  %v587_v62 = vld [vmem:[#allocation6 + $0x28] sm:$0xff] }
  0x6a   : > { %1287 = vmatpush1.bf16.msra.mxu1 %v1286_v51  ;;  %v600_v51 = vld [vmem:[#allocation6 + $0x90] sm:$0xff]  ;;  %v1330_v53 = vpack.c.bf16 %v583_v50, %v582_v48  ;;  %v1334_v59 = vpack.c.bf16 %v585_v56, %v584_v55  ;;  %v586_v61 = vld [vmem:[#allocation6 + $0x20] sm:$0xff]  ;;  %v589_v4 = vld [vmem:[#allocation6 + $0x38] sm:$0xff]  ;;  %v1627_v55 = vmov -5.0  }
  0x6b   : > { %1289 = vmatprep.subr.bf16.mxu1 %v1288_v52  ;;  %v601_v52 = vld [vmem:[#allocation6 + $0x98] sm:$0xff]  ;;  %1329 = vmatprep.subr.bf16.mxu0 %v1328_v49  ;;  %v1338_v1 = vpack.c.bf16 %v587_v62, %v586_v61  ;;  %v588_v3 = vld [vmem:[#allocation6 + $0x30] sm:$0xff]  ;;  %v590_v9 = vld [vmem:[#allocation6 + $0x40] sm:$0xff] }
  0x6c   : > { %v1332_v54 = vpack.c.bf16 %v601_v52, %v600_v51  ;;  %1331 = vmatpush3.bf16.msra.mxu0 %v1330_v53  ;;  %v1342_v7 = vpack.c.bf16 %v589_v4, %v588_v3  ;;  %v591_v10 = vld [vmem:[#allocation6 + $0x48] sm:$0xff]  ;;  %v592_v15 = vld [vmem:[#allocation6 + $0x50] sm:$0xff]  ;;  %v593_v16 = vld [vmem:[#allocation6 + $0x58] sm:$0xff]  ;;  %v686_v52 = vand.u32 127, %v346_v21 }
  0x6d   : > { %v1346_v13 = vpack.c.bf16 %v591_v10, %v590_v9  ;;  %v1350_v19 = vpack.c.bf16 %v593_v16, %v592_v15  ;;  %v594_v34 = vld [vmem:[#allocation6 + $0x60] sm:$0xff]  ;;  %v612_v37 = vld [vmem:[#allocation6 + $0xf0] sm:$0xff]  ;;  %v613_v38 = vld [vmem:[#allocation6 + $0xf8] sm:$0xff] }
  0x6e   : > { %1291 = vmatpush1.bf16.msra.mxu1 %v1290_v57  ;;  %v602_v57 = vld [vmem:[#allocation6 + $0xa0] sm:$0xff]  ;;  %1333 = vmatprep.subr.bf16.mxu0 %v1332_v54  ;;  %v596_v40 = vld [vmem:[#allocation6 + $0x70] sm:$0xff]  ;;  %v597_v41 = vld [vmem:[#allocation6 + $0x78] sm:$0xff]  ;;  %vm687_vm1 = vcmp.ge.s32.totalorder %v686_v52, 1  ;;  %vm688_vm2 = vcmp.lt.s32.totalorder %v686_v52, 10  ;;  %vm690_vm3 = vcmp.eq.s32.totalorder %v686_v52, 5 }
  0x6f   : > { %1293 = vmatprep.subr.bf16.mxu1 %v1292_v58  ;;  %v603_v58 = vld [vmem:[#allocation6 + $0xa8] sm:$0xff]  ;;  %v497_v43 = vld [vmem:[%s2119_s4] sm:$0x3]  ;;  %vm1845_vm4 = vmand %vm687_vm1, %vm688_vm2  ;;  %v691_v56 = vsel %vm690_vm3, 5.0, %v1627_v55  ;;  %vm694_vm5 = vcmp.ge.s32.totalorder %v686_v52, 10  ;;  %vm695_vm6 = vcmp.lt.s32.totalorder %v686_v52, 16 }
  0x70   : > { %v1336_v60 = vpack.c.bf16 %v603_v58, %v602_v57  ;;  %1335 = vmatpush3.bf16.msra.mxu0 %v1334_v59  ;;  %v614_v57 = vld [vmem:[%s2121_s6] sm:$0x1]  ;;  %vm696_vm7 = vmand %vm694_vm5, %vm695_vm6 }
  0x72   : > { %1295 = vmatpush1.bf16.msra.mxu1 %v1294_v63  ;;  %v604_v63 = vld [vmem:[#allocation6 + $0xb0] sm:$0xff]  ;;  %1337 = vmatprep.subr.bf16.mxu0 %v1336_v60  ;;  %v692_v60 = vsel %vm1845_vm4, %v691_v56, 0.0 }
  0x73   : > { %1297 = vmatprep.subr.bf16.mxu1 %v1296_v0  ;;  %v605_v0 = vld [vmem:[#allocation6 + $0xb8] sm:$0xff] }
  0x74   : > { %v1340_v2 = vpack.c.bf16 %v605_v0, %v604_v63  ;;  %1339 = vmatpush3.bf16.msra.mxu0 %v1338_v1  ;;  %v1212_v0 = vadd.s32 4294967286, %v686_v52 }
  0x76   : > { %1299 = vmatpush1.bf16.msra.mxu1 %v1298_v5  ;;  %v606_v5 = vld [vmem:[#allocation6 + $0xc0] sm:$0xff]  ;;  %1341 = vmatprep.subr.bf16.mxu0 %v1340_v2  ;;  %v698_v3 = vand.u32 1, %v1212_v0 }
  0x77   : > { %1301 = vmatprep.subr.bf16.mxu1 %v1300_v6  ;;  %v607_v6 = vld [vmem:[#allocation6 + $0xc8] sm:$0xff] }
  0x78   : > { %v1344_v8 = vpack.c.bf16 %v607_v6, %v606_v5  ;;  %1343 = vmatpush3.bf16.msra.mxu0 %v1342_v7  ;;  %vm699_vm8 = vcmp.eq.s32.totalorder %v698_v3, 0 }
  0x79   : > { %vm700_vm9 = vmand %vm696_vm7, %vm699_vm8 }
  0x7a   : > { %1303 = vmatpush1.bf16.msra.mxu1 %v1302_v11  ;;  %v608_v11 = vld [vmem:[#allocation6 + $0xd0] sm:$0xff]  ;;  %1345 = vmatprep.subr.bf16.mxu0 %v1344_v8 }
  0x7b   : > { %1305 = vmatprep.subr.bf16.mxu1 %v1304_v12  ;;  %v609_v12 = vld [vmem:[#allocation6 + $0xd8] sm:$0xff] }
  0x7c   : > { %v1348_v14 = vpack.c.bf16 %v609_v12, %v608_v11  ;;  %1347 = vmatpush3.bf16.msra.mxu0 %v1346_v13 }
  0x7e   : > { %1307 = vmatpush1.bf16.msra.mxu1 %v1306_v17  ;;  %v610_v17 = vld [vmem:[#allocation6 + $0xe0] sm:$0xff]  ;;  %1349 = vmatprep.subr.bf16.mxu0 %v1348_v14 }
  0x7f   : > { %1309 = vmatprep.subr.bf16.mxu1 %v1308_v18  ;;  %v611_v18 = vld [vmem:[#allocation6 + $0xe8] sm:$0xff] }
  0x80   : > { %v1352_v20 = vpack.c.bf16 %v611_v18, %v610_v17  ;;  %1351 = vmatpush3.bf16.msra.mxu0 %v1350_v19 }
  0x82   : > { %1311 = vmatpush1.bf16.msra.mxu1 %v1310_v23  ;;  %1353 = vmatprep.subr.bf16.mxu0 %v1352_v20  ;;  %v348_v23 = vsub.s32 0, %v347_v22 }
  0x83   : > { %1313 = vmatprep.subr.bf16.mxu1 %v1312_v24  ;;  %v344_v24 = vld [vmem:[%s2117_s2] sm:$0x3] }
  0x84   : > { %v349_v26 = vrot.slane %v344_v24, %v348_v23  ;;  %v353_v27 = vrot.slane %v344_v24, %v352_v25  ;;  %v502_v44 = vrot.slane %v497_v43, %v348_v23 }
  0x86   : > { %1315 = vmatpush1.bf16.msra.mxu1 %v1314_v29 }
  0x87   : > { %1317 = vmatprep.subr.bf16.mxu1 %v1316_v30 }
  0x8a   : > { %1319 = vmatpush1.bf16.msra.mxu1 %v1318_v35  ;;  %v595_v35 = vld [vmem:[#allocation6 + $0x68] sm:$0xff] }
  0x8b   : > { %1321 = vmatprep.subr.bf16.mxu1 %v1320_v36  ;;  %v1354_v36 = vpack.c.bf16 %v595_v35, %v594_v34 }
  0x8d   : > { %1355 = vmatpush3.bf16.msra.mxu0 %v1354_v36 }
  0x8e   : > { %1323 = vmatpush1.bf16.msra.mxu1 %v1322_v39  ;;  %v1356_v39 = vpack.c.bf16 %v613_v38, %v612_v37 }
  0x8f   : > { %1325 = vmatprep.subr.bf16.mxu1 %v1324_v42  ;;  %v1358_v42 = vpack.c.bf16 %v597_v41, %v596_v40 }
  0x90   : > { %1357 = vmatprep.subr.bf16.mxu0 %v1356_v39 }
  0x91   : > { %1359 = vmatpush3.bf16.msra.mxu0 %v1358_v42 }
  0x92   : > { %1327 = vmatpush1.bf16.msra.mxu1 %v1326_v45  ;;  %v506_v45 = vrot.slane %v497_v43, %v352_v25 }
 0x12d   : > { %v426_v28 = vpop.f32.mrb[0].mxu0 }
 0x12e   : > { %v427_v29 = vadd.f32 %v426_v28, %v349_v26  ;;  %v428_v30 = vpop.f32.mrb[1].mxu0 }
 0x12f   : > { %v429_v31 = vadd.f32 %v428_v30, %v353_v27 }
 0x130   : > { %v431_v33 = vmax.f32 %v427_v29, 0.0 }
 0x131   : > { %v432_v32 = vmax.f32 %v429_v31, 0.0 }
 0x133   : > { %573 = vmatprep.mubr.f32.mxu1 %v432_v32 }
 0x134   : > { %574 = vmatmul.mubr.f32.vlgmr.msra.gmra.mrb[0].mxu1 %v431_v33 }
 0x207   : > { %v575_v46 = vpop.f32.mrb[0].mxu1 }
 0x208   : > { %v576_v47 = vadd.f32 %v575_v46, %v502_v44  ;;  %v577_v48 = vpop.f32.mrb[1].mxu1 }
 0x209   : > { %v578_v49 = vadd.f32 %v577_v48, %v506_v45 }
 0x20a   : > { %v580_v51 = vmax.f32 %v576_v47, 0.0 }
 0x20b   : > { %v581_v50 = vmax.f32 %v578_v49, 0.0 }
 0x20d   : > { %679 = vmatprep.mubr.f32.mxu0 %v581_v50 }
 0x20e   : > { %680 = vmatmul.mubr.f32.vlgmr.msra.gmra.mrb[2].mxu0 %v580_v51 }
 0x2e1   : > { %v1253_v53 = vpop.f32.mrb[2].mxu0 }
 0x2e2   : > { %v1254_v58 = vpop.f32.mrb[3].mxu0 }
 0x2e3   : > { %v1255_v59 = vadd.f32 %v1254_v58, %v1253_v53 }
 0x2e5   : > { %v682_v61 = vadd.f32 %v1255_v59, %v614_v57 }
 0x2e7   : > { %v693_v62 = vadd.f32 %v692_v60, %v682_v61 }
 0x2e9   : > { %v1213_v63 = vmul.f32 -1.442695, %v693_v62  ;;  %v707_v4 = vadd.f32 1.0, %v693_v62 }
 0x2eb   : > { %1478 = vpow2.f32 %v1213_v63  ;;  %v708_v6 = vsel %vm700_vm9, %v707_v4, %v693_v62 }
 0x2f5   : > { %v1479_v1 = vpop.eup %1478 }
 0x2f6   : > { %v704_v2 = vadd.f32 1.0, %v1479_v1 }
 0x2f8   : > { %1480 = vrcp.f32 %v704_v2 }
 0x302   : > { %v1481_v5 = vpop.eup %1480 }
 0x303   : > { %v709_v7 = vsel %vm1845_vm4, %v1481_v5, %v708_v6 }
 0x304   : > { %710 = vst [vmem:[#allocation2] sm:$0x1] %v709_v7 }
 0x30b   : > { %v711_v8 = vld [vmem:[#allocation2] sm:$0x1] }
 0x30c   : > { %722 = vrot.lane.b32.xlu1 %v711_v8, %s1628_s19  ;;  %714 = vrot.lane.b32.xlu0 %v711_v8, %s1629_s29  ;;  %1362 = vpush %v711_v8  ;;  %s330_s19 = scalar_select %p329_p12, %s1712_s9, 1 }
 0x310   : > { %726 = vrot.lane.b32.xlu1 %v711_v8, %s1630_s14  ;;  %718 = vrot.lane.b32.xlu0 %v711_v8, %s1631_s21  ;;  %s1361_s14 = smul.u32 24, %s330_s19 }
 0x314   : > { %734 = vrot.lane.b32.xlu1 %v711_v8, %s1632_s23  ;;  %730 = vrot.lane.b32.xlu0 %v711_v8, %s1633_s20 }
 0x318   : > { %742 = vrot.lane.b32.xlu1 %v711_v8, %s1634_s24  ;;  %738 = vrot.lane.b32.xlu0 %v711_v8, %s1635_s17  ;;  %s333_s24 = scalar_lea.vmem %s2122_s7, %s1361_s14 }
 0x319   : > { %v1863_v24 = vld [vmem:[%s333_s24] sm:$0xff]  ;;  %v1865_v26 = vld [vmem:[%s333_s24 + $0x8] sm:$0xff]  ;;  %v1869_v30 = vld [vmem:[%s333_s24 + $0x10] sm:$0x3] }
 0x31c   : > { %750 = vrot.lane.b32.xlu1 %v711_v8, %s1636_s22  ;;  %746 = vrot.lane.b32.xlu0 %v711_v8, %s1637_s25 }
 0x320   : > { %758 = vrot.lane.b32.xlu1 %v711_v8, %s1638_s26  ;;  %754 = vrot.lane.b32.xlu0 %v711_v8, %s1639_s10 }
 0x324   : > { %766 = vrot.lane.b32.xlu1 %v711_v8, %s1640_s12  ;;  %762 = vrot.lane.b32.xlu0 %v711_v8, %s1641_s13 }
 0x328   : > { %770 = vrot.lane.b32.xlu0 %v711_v8, %s1642_s18 }
 0x33d   : > { %s1363_s17 = spop %1362 }
 0x33e   : > { %v777_v25 = vstv %s1363_s17 }
 0x33f   : > { %v778_v27 = vmul.f32 %v777_v25, %v1863_v24  ;;  %v779_v28 = vmul.f32 %v777_v25, %v1865_v26  ;;  %v780_v32 = vmul.f32 %v777_v25, %v1869_v30 }
 0x341   : > { %v781_v29 = vmul.f32 1.442695, %v778_v27  ;;  %v783_v31 = vmul.f32 1.442695, %v779_v28  ;;  %v785_v33 = vmul.f32 1.442695, %v780_v32 }
 0x343   : > { %1482 = vpow2.f32 %v781_v29 }
 0x344   : > { %1484 = vpow2.f32 %v783_v31 }
 0x345   : > { %1486 = vpow2.f32 %v785_v33 }
 0x34d   : > { %v1872_v34 = vpop.eup %1482 }
 0x34e   : > { %v1874_v35 = vpop.eup %1484 }
 0x34f   : > { %v1487_v44 = vpop.eup %1486 }
 0x37e   : > { %v723_v9 = vpop.permute.xlu1 %722  ;;  %v715_v10 = vpop.permute.xlu0 %714 }
 0x37f   : > { %1364 = vpush %v715_v10 }
 0x382   : > { %v727_v11 = vpop.permute.xlu1 %726  ;;  %v719_v12 = vpop.permute.xlu0 %718 }
 0x383   : > { %1366 = vpush %v719_v12 }
 0x384   : > { %1368 = vpush %v723_v9 }
 0x385   : > { %1370 = vpush %v727_v11 }
 0x386   : > { %v735_v13 = vpop.permute.xlu1 %734  ;;  %v731_v14 = vpop.permute.xlu0 %730 }
 0x387   : > { %1372 = vpush %v731_v14 }
 0x388   : > { %1374 = vpush %v735_v13 }
 0x38a   : > { %v743_v15 = vpop.permute.xlu1 %742  ;;  %v739_v16 = vpop.permute.xlu0 %738 }
 0x38b   : > { %1376 = vpush %v739_v16 }
 0x38c   : > { %1378 = vpush %v743_v15 }
 0x38e   : > { %v751_v17 = vpop.permute.xlu1 %750  ;;  %v747_v18 = vpop.permute.xlu0 %746 }
 0x38f   : > { %1380 = vpush %v747_v18 }
 0x390   : > { %1382 = vpush %v751_v17 }
 0x392   : > { %v759_v19 = vpop.permute.xlu1 %758  ;;  %v755_v20 = vpop.permute.xlu0 %754 }
 0x393   : > { %1384 = vpush %v755_v20 }
 0x394   : > { %1386 = vpush %v759_v19 }
 0x396   : > { %v767_v21 = vpop.permute.xlu1 %766  ;;  %v763_v22 = vpop.permute.xlu0 %762 }
 0x397   : > { %1388 = vpush %v763_v22 }
 0x398   : > { %1390 = vpush %v767_v21 }
 0x39a   : > { %v771_v23 = vpop.permute.xlu0 %770 }
 0x39b   : > { %1392 = vpush %v771_v23 }
 0x3b0   : > { %s1365_s22 = spop %1364 }
 0x3b1   : > { %v787_v36 = vstv %s1365_s22 }
 0x3b2   : > { %v1877_v37 = vmul.f32 %v1872_v34, %v787_v36  ;;  %v1880_v38 = vmul.f32 %v1874_v35, %v787_v36 }
 0x3b4   : > { %s1367_s25 = spop %1366 }
 0x3b5   : > { %v796_v39 = vstv %s1367_s25  ;;  %s1369_s26 = spop %1368 }
 0x3b6   : > { %v797_v40 = vmul.f32 %v1872_v34, %v796_v39  ;;  %v798_v41 = vmul.f32 %v1874_v35, %v796_v39  ;;  %s1371_s10 = spop %1370  ;;  %v821_v42 = vstv %s1369_s26  ;;  %s1394_s26 = smul.u32 768, %s1712_s9 }
 0x3b7   : > { %v846_v43 = vstv %s1371_s10  ;;  %v1895_v48 = vmul.f32 %v1874_v35, %v821_v42  ;;  %v1898_v49 = vmul.f32 %v1872_v34, %v821_v42 }
 0x3b8   : > { %v1885_v45 = vmul.f32 %v1872_v34, %v846_v43  ;;  %v1888_v46 = vmul.f32 %v1874_v35, %v846_v43  ;;  %815 = vrot.lane.b32.xlu0 %v798_v41, %s1629_s29  ;;  %v1891_v47 = vmul.f32 %v1487_v44, %v846_v43  ;;  %813 = vrot.lane.b32.xlu1 %v797_v40, %s1629_s29  ;;  %s1373_s12 = spop %1372 }
 0x3b9   : > { %s1375_s13 = spop %1374  ;;  %v800_v50 = vmul.f32 %v798_v41, %v1865_v26  ;;  %v799_v51 = vmul.f32 %v797_v40, %v1863_v24  ;;  %v878_v52 = vstv %s1373_s12 }
 0x3ba   : > { %v917_v54 = vstv %s1375_s13  ;;  %v1913_v58 = vmul.f32 %v1874_v35, %v878_v52  ;;  %v1915_v59 = vmul.f32 %v1487_v44, %v878_v52  ;;  %v1918_v60 = vmul.f32 %v1872_v34, %v878_v52 }
 0x3bb   : > { %v850_v61 = vmul.f32 %v1885_v45, %v1863_v24  ;;  %v1923_v62 = vmul.f32 %v1874_v35, %v917_v54  ;;  %v1925_v63 = vmul.f32 %v1487_v44, %v917_v54  ;;  %v851_v0 = vmul.f32 %v1888_v46, %v1865_v26 }
 0x3bc   : > { %840 = vrot.lane.b32.xlu0 %v1895_v48, %s1631_s21  ;;  %838 = vrot.lane.b32.xlu1 %v1898_v49, %s1631_s21  ;;  %s1377_s18 = spop %1376  ;;  %v869_v1 = vrot.slane %v1885_v45, 1  ;;  %v905_v2 = vrot.slane %v1913_v58, 1  ;;  %v907_v3 = vrot.slane %v1915_v59, 1  ;;  %v870_v4 = vrot.slane %v1888_v46, 1 }
 0x3bd   : > { %v956_v53 = vstv %s1377_s18  ;;  %s1379_s19 = spop %1378  ;;  %v904_v5 = vrot.slane %v1918_v60, 1  ;;  %v1935_v6 = vmul.f32 %v1872_v34, %v917_v54  ;;  %v852_v8 = vmul.f32 %v1891_v47, %v1869_v30  ;;  %s2064_s18 = scalar_lea.hbm %s2123_s8, %s1394_s26 }
 0x3be   : > { %v1909_v55 = vmul.f32 %v1872_v34, %v956_v53  ;;  %v958_v56 = vmul.f32 %v1874_v35, %v956_v53  ;;  %v959_v57 = vmul.f32 %v1487_v44, %v956_v53  ;;  %v988_v7 = vstv %s1379_s19 }
 0x3bf   : > { %v857_v9 = vrot.slane %v850_v61, 1  ;;  %v872_v10 = vrot.slane %v1891_v47, 1  ;;  %v944_v11 = vrot.slane %v1923_v62, 1  ;;  %v946_v12 = vrot.slane %v1925_v63, 1 }
 0x3c0   : > { %805 = vrot.lane.b32.xlu0 %v800_v50, %s1629_s29  ;;  %803 = vrot.lane.b32.xlu1 %v799_v51, %s1629_s29  ;;  %s1381_s14 = spop %1380  ;;  %v960_v13 = vmul.f32 %v1909_v55, %v1863_v24  ;;  %v961_v14 = vmul.f32 %v958_v56, %v1865_v26  ;;  %v962_v16 = vmul.f32 %v959_v57, %v1869_v30  ;;  %v858_v20 = vrot.slane %v851_v0, 1 }
 0x3c1   : > { %v1027_v15 = vstv %s1381_s14  ;;  %v990_v17 = vmul.f32 %v1874_v35, %v988_v7  ;;  %v991_v18 = vmul.f32 %v1487_v44, %v988_v7  ;;  %v908_v19 = vsel %vm856_vm10, %v905_v2, %v907_v3 }
 0x3c2   : > { %v943_v21 = vrot.slane %v1935_v6, 1  ;;  %v989_v22 = vmul.f32 %v1872_v34, %v988_v7  ;;  %v906_v23 = vsel %vm856_vm10, %v904_v5, %v905_v2  ;;  %v860_v25 = vrot.slane %v852_v8, 1 }
 0x3c3   : > { %v979_v27 = vrot.slane %v1909_v55, 2  ;;  %v1029_v28 = vmul.f32 %v1874_v35, %v1027_v15  ;;  %v1030_v29 = vmul.f32 %v1487_v44, %v1027_v15  ;;  %v967_v31 = vrot.slane %v960_v13, 2 }
 0x3c4   : > { %911 = vrot.lane.b32.xlu0 %v908_v19, %s1629_s29  ;;  %909 = vrot.lane.b32.xlu1 %v906_v23, %s1629_s29  ;;  %v968_v32 = vrot.slane %v961_v14, 2  ;;  %v980_v33 = vrot.slane %v958_v56, 2  ;;  %v982_v36 = vrot.slane %v959_v57, 2  ;;  %v970_v39 = vrot.slane %v962_v16, 2 }
 0x3c5   : > { %v1015_v40 = vrot.slane %v990_v17, 2  ;;  %v1017_v41 = vrot.slane %v991_v18, 2  ;;  %v947_v42 = vsel %vm856_vm10, %v944_v11, %v946_v12  ;;  %v1014_v43 = vrot.slane %v989_v22, 2 }
 0x3c6   : > { %v1028_v45 = vmul.f32 %v1872_v34, %v1027_v15  ;;  %v945_v46 = vsel %vm856_vm10, %v943_v21, %v944_v11  ;;  %v1054_v35 = vrot.slane %v1029_v28, 2  ;;  %v1056_v44 = vrot.slane %v1030_v29, 2 }
 0x3c7   : > { %v1961_v47 = vsel %vm856_vm10, %v870_v4, %v872_v10  ;;  %v1964_v50 = vsel %vm856_vm10, %v869_v1, %v870_v4  ;;  %v1967_v51 = vsel %vm966_vm11, %v980_v33, %v982_v36  ;;  %v1970_v52 = vsel %vm966_vm11, %v979_v27, %v980_v33 }
 0x3c8   : > { %950 = vrot.lane.b32.xlu0 %v947_v42, %s1631_s21  ;;  %948 = vrot.lane.b32.xlu1 %v945_v46, %s1631_s21  ;;  %v1973_v34 = vsel %vm856_vm10, %v858_v20, %v860_v25  ;;  %v1018_v53 = vsel %vm966_vm11, %v1015_v40, %v1017_v41  ;;  %v1977_v54 = vsel %vm856_vm10, %v857_v9, %v858_v20  ;;  %v1053_v57 = vrot.slane %v1028_v45, 2 }
 0x3c9   : > { %v1980_v55 = vsel %vm966_vm11, %v968_v32, %v970_v39  ;;  %v1983_v56 = vsel %vm966_vm11, %v967_v31, %v968_v32  ;;  %v1016_v61 = vsel %vm966_vm11, %v1014_v43, %v1015_v40  ;;  %v883_v0 = vmul.f32 %v1913_v58, %v1865_v26 }
 0x3ca   : > { %v884_v1 = vmul.f32 %v1915_v59, %v1869_v30  ;;  %v1057_v2 = vsel %vm966_vm11, %v1054_v35, %v1056_v44  ;;  %v882_v3 = vmul.f32 %v1918_v60, %v1863_v24  ;;  %v1055_v4 = vsel %vm966_vm11, %v1053_v57, %v1054_v35 }
 0x3cb   : > { %v824_v5 = vmul.f32 %v1898_v49, %v1863_v24  ;;  %v825_v58 = vmul.f32 %v1895_v48, %v1865_v26  ;;  %v889_v7 = vrot.slane %v883_v0, 1  ;;  %v922_v59 = vmul.f32 %v1923_v62, %v1865_v26 }
 0x3cc   : > { %1021 = vrot.lane.b32.xlu0 %v1018_v53, %s1629_s29  ;;  %1019 = vrot.lane.b32.xlu1 %v1016_v61, %s1629_s29  ;;  %v891_v8 = vrot.slane %v884_v1, 1  ;;  %v923_v60 = vmul.f32 %v1925_v63, %v1869_v30  ;;  %v888_v9 = vrot.slane %v882_v3, 1  ;;  %v921_v10 = vmul.f32 %v1935_v6, %v1863_v24 }
 0x3cd   : > { %v993_v49 = vmul.f32 %v990_v17, %v1865_v26  ;;  %v928_v11 = vrot.slane %v922_v59, 1  ;;  %v994_v12 = vmul.f32 %v991_v18, %v1869_v30  ;;  %v992_v14 = vmul.f32 %v989_v22, %v1863_v24 }
 0x3ce   : > { %v930_v48 = vrot.slane %v923_v60, 1  ;;  %v892_v13 = vsel %vm856_vm10, %v889_v7, %v891_v8  ;;  %v927_v62 = vrot.slane %v921_v10, 1  ;;  %v890_v63 = vsel %vm856_vm10, %v888_v9, %v889_v7 }
 0x3cf   : > { %v999_v6 = vrot.slane %v993_v49, 2  ;;  %v1001_v15 = vrot.slane %v994_v12, 2  ;;  %v1032_v16 = vmul.f32 %v1029_v28, %v1865_v26  ;;  %v1033_v17 = vmul.f32 %v1030_v29, %v1869_v30 }
 0x3d0   : > { %1060 = vrot.lane.b32.xlu0 %v1057_v2, %s1631_s21  ;;  %1058 = vrot.lane.b32.xlu1 %v1055_v4, %s1631_s21  ;;  %v931_v19 = vsel %vm856_vm10, %v928_v11, %v930_v48  ;;  %v998_v18 = vrot.slane %v992_v14, 2  ;;  %v1031_v20 = vmul.f32 %v1028_v45, %v1863_v24  ;;  %v929_v21 = vsel %vm856_vm10, %v927_v62, %v928_v11 }
 0x3d1   : > { %v1038_v22 = vrot.slane %v1032_v16, 2  ;;  %v1040_v23 = vrot.slane %v1033_v17, 2  ;;  %v1002_v25 = vsel %vm966_vm11, %v999_v6, %v1001_v15  ;;  %v790_v10 = vmul.f32 %v1877_v37, %v1863_v24 }
 0x3d2   : > { %v1037_v27 = vrot.slane %v1031_v20, 2  ;;  %v1000_v30 = vsel %vm966_vm11, %v998_v18, %v999_v6 }
 0x3d3   : > { %v1041_v28 = vsel %vm966_vm11, %v1038_v22, %v1040_v23 }
 0x3d4   : > { %830 = vrot.lane.b32.xlu0 %v825_v58, %s1631_s21  ;;  %828 = vrot.lane.b32.xlu1 %v824_v5, %s1631_s21  ;;  %v1039_v29 = vsel %vm966_vm11, %v1037_v27, %v1038_v22 }
 0x3d8   : > { %895 = vrot.lane.b32.xlu0 %v892_v13, %s1629_s29  ;;  %893 = vrot.lane.b32.xlu1 %v890_v63, %s1629_s29 }
 0x3dc   : > { %934 = vrot.lane.b32.xlu0 %v931_v19, %s1631_s21  ;;  %932 = vrot.lane.b32.xlu1 %v929_v21, %s1631_s21 }
 0x3e0   : > { %1005 = vrot.lane.b32.xlu0 %v1002_v25, %s1629_s29  ;;  %1003 = vrot.lane.b32.xlu1 %v1000_v30, %s1629_s29  ;;  %s326_s29 = sand.u32 1, %s1610_s28  }
 0x3e1   : > { %s1360_s20 = smul.u32 48, %s326_s29  ;;  %s2074_s19 = scalar_lea.sflag [#allocation5], %s326_s29 }
 0x3e3   : > { %s328_s10 = scalar_lea.vmem [#allocation8], %s1360_s20 }
 0x3e4   : > { %1044 = vrot.lane.b32.xlu0 %v1041_v28, %s1631_s21  ;;  %1042 = vrot.lane.b32.xlu1 %v1039_v29, %s1631_s21  ;;  %s2045_s21 = spop %1382  ;;  %s1117_s12 = sshll.u32 %s328_s10, 4  ;;  %s2059_s12 = int_to_ptr.vmem [resolvable:$true] %s1117_s12 }
 0x3e5   : > { %s2048_s23 = spop %1384  ;;  %s1548_s14 = scalar_lea.vmem %s2059_s12, 768 }
 0x3e6   : > { %s1387_s24 = spop %1386  ;;  %p1549_p10 = scmp.ne.s32.totalorder %s2059_s12, %s1548_s14 }
 0x3e7   : > { %s2053_s17 = spop %1388 }
 0x3e8   : > { %s1391_s22 = spop %1390  ;;  %p1550_p2 = pnand %p1549_p10, %p2141_p1 }
 0x3e9   : > { %s1393_s25 = spop %1392 }
 0x3ea   : > { %p1551_p3 = pneg %p1550_p2 }
 0x42a   : > { %v816_v31 = vpop.permute.xlu0 %815  ;;  %v814_v32 = vpop.permute.xlu1 %813 }
 0x42b   : > { %v820_v33 = vadd.f32 %v816_v31, %v1880_v38  ;;  %v819_v36 = vadd.f32 %v814_v32, %v1877_v37 }
 0x42e   : > { %v841_v39 = vpop.permute.xlu0 %840  ;;  %v839_v41 = vpop.permute.xlu1 %838 }
 0x42f   : > { %v845_v40 = vadd.f32 %v841_v39, %v820_v33  ;;  %v844_v42 = vadd.f32 %v839_v41, %v819_v36  ;;  %v1076_v33 = vstv %s2045_s21  ;;  %v1085_v36 = vstv %s2048_s23  ;;  %s1643_s21 = smov [#allocation8]  }
 0x430   : > { %v1079_v41 = vstv %s2053_s17  ;;  %s1552_s23 = sshll.u32 %s1643_s21, 4  ;;  %s1553_s23 = int_to_ptr.vmem [resolvable:$false] %s1552_s23 }
 0x431   : > { %v877_v43 = vadd.f32 %v1961_v47, %v845_v40  ;;  %v876_v45 = vadd.f32 %v1964_v50, %v844_v42  ;;  %v791_v50 = vmul.f32 %v1880_v38, %v1865_v26  ;;  %v1094_v40 = vstv %s1387_s24  ;;  %s1554_s20 = scalar_lea.vmem %s1553_s23, 1536  ;;  %p1555_p4 = scmp.lt.s32.totalorder %s2059_s12, %s1553_s23 }
 0x432   : > { %v806_v46 = vpop.permute.xlu0 %805  ;;  %v804_v35 = vpop.permute.xlu1 %803  ;;  %v1088_v42 = vstv %s1391_s22  ;;  %p1556_p7 = scmp.lt.s32.totalorder %s1554_s20, %s1548_s14 }
 0x433   : > { %v810_v11 = vadd.f32 %v806_v46, %v791_v50  ;;  %v809_v48 = vadd.f32 %v804_v35, %v790_v10 }
 0x434   : > { %p1557_p8 = por %p1556_p7, %p1555_p4 }
 0x436   : > { %v912_v44 = vpop.permute.xlu0 %911  ;;  %v910_v53 = vpop.permute.xlu1 %909  ;;  %p1558_p11 = pnand %p1557_p8, %p1551_p3 }
 0x437   : > { %v916_v57 = vadd.f32 %v912_v44, %v877_v43  ;;  %v915_v61 = vadd.f32 %v910_v53, %v876_v45  ;;  %v1097_v45 = vstv %s1393_s25 }
 0x43a   : > { %v951_v0 = vpop.permute.xlu0 %950  ;;  %v949_v2 = vpop.permute.xlu1 %948 }
 0x43b   : > { %v955_v1 = vadd.f32 %v951_v0, %v916_v57  ;;  %v954_v3 = vadd.f32 %v949_v2, %v915_v61 }
 0x43d   : > { %v987_v4 = vadd.f32 %v1967_v51, %v955_v1  ;;  %v986_v58 = vadd.f32 %v1970_v52, %v954_v3 }
 0x43e   : > { %v1022_v5 = vpop.permute.xlu0 %1021  ;;  %v1020_v7 = vpop.permute.xlu1 %1019 }
 0x43f   : > { %v1026_v8 = vadd.f32 %v1022_v5, %v987_v4  ;;  %v1025_v47 = vadd.f32 %v1020_v7, %v986_v58 }
 0x442   : > { %v1061_v59 = vpop.permute.xlu0 %1060  ;;  %v1059_v9 = vpop.permute.xlu1 %1058 }
 0x443   : > { %v1065_v60 = vadd.f32 %v1061_v59, %v1026_v8  ;;  %v1064_v49 = vadd.f32 %v1059_v9, %v1025_v47 }
 0x445   : > { %1488 = vrcp.f32 %v1065_v60 }
 0x446   : > { %1490 = vrcp.f32 %v1064_v49  ;;  %v831_v51 = vpop.permute.xlu0 %830  ;;  %v829_v52 = vpop.permute.xlu1 %828 }
 0x447   : > { %v835_v12 = vadd.f32 %v831_v51, %v810_v11  ;;  %v834_v13 = vadd.f32 %v829_v52, %v809_v48 }
 0x449   : > { %v865_v62 = vadd.f32 %v1973_v34, %v835_v12  ;;  %v864_v26 = vadd.f32 %v1977_v54, %v834_v13 }
 0x44a   : > { %v896_v14 = vpop.permute.xlu0 %895  ;;  %v894_v38 = vpop.permute.xlu1 %893 }
 0x44b   : > { %v900_v63 = vadd.f32 %v896_v14, %v865_v62  ;;  %v899_v6 = vadd.f32 %v894_v38, %v864_v26 }
 0x44e   : > { %v935_v15 = vpop.permute.xlu0 %934  ;;  %v933_v16 = vpop.permute.xlu1 %932 }
 0x44f   : > { %v1489_v24 = vpop.eup %1488  ;;  %v939_v37 = vadd.f32 %v935_v15, %v900_v63  ;;  %v938_v18 = vadd.f32 %v933_v16, %v899_v6 }
 0x450   : > { %v1491_v17 = vpop.eup %1490  ;;  %v1069_v19 = vmul.f32 %v1489_v24, %v1065_v60 }
 0x451   : > { %v1068_v20 = vmul.f32 %v1491_v17, %v1064_v49  ;;  %v975_v34 = vadd.f32 %v1980_v55, %v939_v37  ;;  %v974_v21 = vadd.f32 %v1983_v56, %v938_v18 }
 0x452   : > { %v1006_v54 = vpop.permute.xlu0 %1005  ;;  %v1071_v22 = vsub.f32 2.0, %v1069_v19  ;;  %v1004_v23 = vpop.permute.xlu1 %1003 }
 0x453   : > { %v1070_v25 = vsub.f32 2.0, %v1068_v20  ;;  %v1010_v27 = vadd.f32 %v1006_v54, %v975_v34  ;;  %v1009_v30 = vadd.f32 %v1004_v23, %v974_v21 }
 0x454   : > { %v1073_v28 = vmul.f32 %v1489_v24, %v1071_v22 }
 0x455   : > { %v1072_v56 = vmul.f32 %v1491_v17, %v1070_v25 }
 0x456   : > { %v1045_v55 = vpop.permute.xlu0 %1044  ;;  %v1043_v31 = vpop.permute.xlu1 %1042 }
 0x457   : > { %v1049_v29 = vadd.f32 %v1045_v55, %v1010_v27  ;;  %v1048_v32 = vadd.f32 %v1043_v31, %v1009_v30 }
 0x459   : > { %v1075_v39 = vmul.f32 %v1073_v28, %v1049_v29  ;;  %v1074_v43 = vmul.f32 %v1072_v56, %v1048_v32 }
 0x45b   : > { %v1078_v46 = vmul.f32 %v1076_v33, %v1075_v39  ;;  %v1087_v35 = vmul.f32 %v1085_v36, %v1075_v39  ;;  %v1096_v44 = vmul.f32 %v1094_v40, %v1075_v39  ;;  %v1077_v53 = vmul.f32 %v1076_v33, %v1074_v43 }
 0x45c   : > { %v1086_v57 = vmul.f32 %v1085_v36, %v1074_v43  ;;  %v1095_v61 = vmul.f32 %v1094_v40, %v1074_v43 }
 0x45d   : > { %v1081_v0 = vadd.f32 %v1079_v41, %v1078_v46  ;;  %v1090_v1 = vadd.f32 %v1088_v42, %v1087_v35  ;;  %v1099_v2 = vadd.f32 %v1097_v45, %v1096_v44  ;;  %v1080_v3 = vadd.f32 %v1079_v41, %v1077_v53 }
 0x45e   : > { %v1089_v4 = vadd.f32 %v1088_v42, %v1086_v57  ;;  %v1098_v5 = vadd.f32 %v1097_v45, %v1095_v61 }
 0x45f   : > { %1084 = vst.msk [vmem:[%s328_s10 + $0x8] sm:$0xff] %vm1082_vm12, %v1081_v0  ;;  %1215 = vst.msk [vmem:[%s328_s10 + $0x18] sm:$0xff] %vm1082_vm12, %v1090_v1 }
 0x460   : > { %1217 = vst.msk [vmem:[%s328_s10 + $0x28] sm:$0xff] %vm1082_vm12, %v1099_v2  ;;  %1083 = vst.msk [vmem:[%s328_s10] sm:$0xff] %vm1082_vm12, %v1080_v3 }
 0x461   : > { %1214 = vst.msk [vmem:[%s328_s10 + $0x10] sm:$0xff] %vm1082_vm12, %v1089_v4  ;;  %1216 = vst.msk [vmem:[%s328_s10 + $0x20] sm:$0xff] %vm1082_vm12, %v1098_v5 }
 0x462   : > { %1561 = shalt.err (!%p1558_p11)
}
 0x463   : > { %s1562_s29 = scalar_lea.hbm %s2064_s18, 768  ;;  %s1566_s22 = scalar_lea.hbm %s2123_s8, 1536 }
 0x464   : > { %p1563_p13 = scmp.ne.s32.totalorder %s2064_s18, %s1562_s29  ;;  %p1567_p6 = scmp.lt.u32.totalorder %s2064_s18, %s2123_s8 }
 0x465   : > { %p1568_p9 = scmp.lt.u32.totalorder %s1566_s22, %s1562_s29  ;;  %p1570_p10 = scmp.lt.u32.totalorder %s1562_s29, %s2064_s18 }
 0x466   : > { %p1564_p0 = pnand %p1563_p13, %p2141_p1 }
 0x467   : > { %p1569_p12 = por %p1568_p9, %p1567_p6 }
 0x468   : > { %p1565_p5 = pneg %p1564_p0 }
 0x469   : > { %p1571_p2 = por %p1570_p10, %p1569_p12 }
 0x46b   : > { %p1572_p3 = pnand %p1571_p2, %p1565_p5 }
 0x46d   : > { %1575 = shalt.err (!%p1572_p3)
}
 0x46e   : > { %s1644_s10 = smov 128   ;;  %s1645_s9 = smov 8  }
 0x46f   : > { %1403 = dma.vmem_to_hbm [thread:$0]  (%p2141_p1), %s2059_s12, 768, %s2064_s18, %s2074_s19, %s1644_s10, %s1644_s10, %s1645_s9  }
 0x470 PF: > { %p1420_p4 = scmp.ge.s32.totalorder %s1618_s30, 2  ;;  %s1132_s13 = sand.u32 1, %s1606_s27  }
 0x471   : > { %p2142_p7 = scmp.ne.s32.totalorder %s2131_s16, 0  ;;  %s1133_s14 = scalar_lea.sflag [#allocation5], %s1132_s13 }
 0x473   : > { %p1413_p8 = pnand %p1420_p4, %p2142_p7 }
 0x475   : > { %1601 = dma.done.wait (!%p1413_p8), %s1133_s14, 768  }
 0x476   : > { %1603 = vsyncadd (!%p1413_p8), %s1133_s14, 4294966528  ;;  %s2143_s21 = sld [smem:[#allocation12_spill]]  ;;  %s2144_s29 = sld [smem:[#allocation13_spill]] }
 0x477   : > { %p20_p11 = scmp.ge.s32.totalorder %s1716_s11, 4   ;;  %s2145_s27 = smov %s1610_s28 }
 0x478   : > { %s2147_s30 = smov %s1716_s11 }
 0x479   :  { %22 = sbr.rel (!%p20_p11) target bundleno = 5 (0x5), region = 99 }
 0x47c   : > { %s2146_s28 = smov %s2143_s21 }
 0x480   :  { %1138 = vsyncpa [#allocation4], 1 }
 0x481   :  { %1140 = vsyncpa [#allocation4 + $0x1], 1 }
 0x482   :  { %1141 = vsyncpa [#allocation7], 1 }
 0x483   :  { %1142 = vsyncpa [#allocation5], 1 }
 0x484   :  { %1144 = vsyncpa [#allocation5 + $0x1], 1 }

</bundles_post_ra>
